<compile_context>
chip_gen: v5e
topology: v5e:2x2
jax: 0.10.0
libtpu: 0.0.40
codegen_flags: <defaults>
</compile_context>

<pallas_src>
import jax
import jax.numpy as jnp
from jax.experimental import pallas as pl
from jax.experimental.pallas import tpu as pltpu

VOCAB_SIZE = 100
EMBED_DIM = 64
SEQ_LEN = 20                      # fc1 in_features = embed_dim * 20
HIDDEN_DIM = 128
NUM_CLASSES = 2

VOCAB_PAD = ((VOCAB_SIZE + 127) // 128) * 128   # 128 -> lane-aligned one-hot chunk width
K_TOTAL = SEQ_LEN * VOCAB_PAD                   # 2560: contraction dim of the fused matmul
OUT_PAD = 128                                   # lane-dense logits; slice [:, :2] outside


def _round_up(x, m):
    return (x + m - 1) // m * m


def _choose_batch_tile(B):
    """Rows per grid step: multiple of 16 (bf16 sublane packing), capped at 512, and
    >= 2 grid steps whenever the batch allows so v7x's two TensorCores both engage."""
    b16 = _round_up(max(B, 1), 16)
    if b16 <= 16:
        return b16
    half = _round_up((b16 + 1) // 2, 16)
    return min(512, half)


def _fused_qa_kernel(ids_ref, tbl_ref, w2_ref, b2_ref, o_ref):
    """one-hot build -> single K=2560 MXU matmul (= embedding gather + flatten + fc1 + b1)
    -> ReLU -> fc2 (+ b2) -> lane-dense f32 store.

    ids_ref : (TB, SEQ)                 int32
    tbl_ref : (SEQ*VOCAB_PAD, HIDDEN)   bf16   row s*128+v = emb[v] @ W1[s] (+ b1 on s==0 block)
    w2_ref  : (HIDDEN, OUT_PAD)         bf16   cols >= NUM_CLASSES are zero
    b2_ref  : (1, OUT_PAD)              f32
    o_ref   : (TB, OUT_PAD)             f32
    """
    tb = ids_ref.shape[0]
    ids = ids_ref[...]                                                  # (TB, SEQ) int32
    lane = jax.lax.broadcasted_iota(jnp.int32, (tb, VOCAB_PAD), 1)      # vocab index per lane

    # bf16 one-hot built directly from the compare (no f32 intermediate). The 20
    # lane-aligned (TB, 128) chunks concatenate into one (TB, 2560) MXU operand.
    onehot = jnp.concatenate(
        [(ids[:, s:s + 1] == lane).astype(jnp.bfloat16) for s in range(SEQ_LEN)],
        axis=-1)                                                        # (TB, 2560) bf16

    # Single big matmul: the MXU does the reduction over (position, vocab); this is
    # mathematically flatten(embedding(ids)) @ W1 + b1 (b1 folded into the table).
    h = jnp.dot(onehot, tbl_ref[...], preferred_element_type=jnp.float32)   # (TB, HID) f32
    h = jnp.maximum(h, 0.0)                                                 # ReLU
    o_ref[...] = jnp.dot(h.astype(jnp.bfloat16), w2_ref[...],
                         preferred_element_type=jnp.float32) + b2_ref[...]  # (TB, OUT_PAD) f32


def _prepare_tables(params):
    """Fold embedding, fc1 weight and fc1 bias into one bf16 table; pad fc2 to 128 lanes."""
    emb_table, w1, b1, w2, b2 = params
    emb_pad = jnp.zeros((VOCAB_PAD, EMBED_DIM), jnp.float32)
    emb_pad = emb_pad.at[:VOCAB_SIZE].set(emb_table.astype(jnp.float32))
    w1_3d = w1.astype(jnp.float32).reshape(SEQ_LEN, EMBED_DIM, HIDDEN_DIM)
    # T[s] = emb_pad @ W1[s]  -> (SEQ, VOCAB_PAD, HIDDEN).  Fold b1 into the position-0
    # block: every per-position one-hot row sums to exactly 1, so b1 is added exactly once.
    tbl = jnp.einsum('ve,seh->svh', emb_pad, w1_3d)
    tbl = tbl.at[0].add(b1.astype(jnp.float32)[None, :])
    tbl = tbl.reshape(K_TOTAL, HIDDEN_DIM).astype(jnp.bfloat16)

    w2_pad = jnp.zeros((HIDDEN_DIM, OUT_PAD), jnp.bfloat16)
    w2_pad = w2_pad.at[:, :NUM_CLASSES].set(w2.astype(jnp.bfloat16))
    b2_pad = jnp.zeros((1, OUT_PAD), jnp.float32)
    b2_pad = b2_pad.at[:, :NUM_CLASSES].set(b2.reshape(1, NUM_CLASSES).astype(jnp.float32))
    return tbl, w2_pad, b2_pad


def qa_forward_pallas(input_ids, params):
    """Forward pass of SimpleQAModel. input_ids: (B, SEQ_LEN) int. Returns (B, 2) f32.

    NOTE: ids in [VOCAB_SIZE, 127] hit zero-padded table rows and contribute 0
    (PyTorch nn.Embedding would raise); inputs are assumed in-range.
    """
    B = input_ids.shape[0]
    tbl, w2_pad, b2_pad = _prepare_tables(params)

    TB = _choose_batch_tile(B)
    B_pad = _round_up(B, TB)
    ids = input_ids.astype(jnp.int32)
    if B_pad != B:
        ids = jnp.pad(ids, ((0, B_pad - B), (0, 0)))   # pad rows use token 0, sliced off below
    nb = B_pad // TB

    flops = 2 * B_pad * K_TOTAL * HIDDEN_DIM + 2 * B_pad * HIDDEN_DIM * OUT_PAD
    bytes_accessed = (ids.size * 4 + tbl.size * 2 + w2_pad.size * 2
                      + b2_pad.size * 4 + B_pad * OUT_PAD * 4)

    out_full = pl.pallas_call(
        _fused_qa_kernel,
        out_shape=jax.ShapeDtypeStruct((B_pad, OUT_PAD), jnp.float32),
        grid=(nb,),
        in_specs=[
            pl.BlockSpec((TB, SEQ_LEN), lambda i: (i, 0)),           # ids: streamed per tile
            pl.BlockSpec((K_TOTAL, HIDDEN_DIM), lambda i: (0, 0)),   # fused emb@W1(+b1) table,
            pl.BlockSpec((HIDDEN_DIM, OUT_PAD), lambda i: (0, 0)),   #   constant index_maps ->
            pl.BlockSpec((1, OUT_PAD), lambda i: (0, 0)),            #   VMEM-resident weights
        ],
        out_specs=pl.BlockSpec((TB, OUT_PAD), lambda i: (i, 0)),     # lane-dense f32 store
        compiler_params=pltpu.CompilerParams(dimension_semantics=("parallel",)),
        cost_estimate=pl.CostEstimate(flops=flops, transcendentals=0,
                                      bytes_accessed=bytes_accessed),
    )(ids, tbl, w2_pad, b2_pad)

    return out_full[:B, :NUM_CLASSES]


def init_params(key):
    k_emb, k_w1, k_b1, k_w2, k_b2 = jax.random.split(key, 5)
    in1 = EMBED_DIM * SEQ_LEN
    emb_table = jax.random.normal(k_emb, (VOCAB_SIZE, EMBED_DIM), jnp.float32)
    # Weights stored as (in_features, out_features) == torch W.T; uniform(+-1/sqrt(fan_in)).
    w1 = jax.random.uniform(k_w1, (in1, HIDDEN_DIM), jnp.float32,
                            -1.0 / jnp.sqrt(in1), 1.0 / jnp.sqrt(in1))
    b1 = jax.random.uniform(k_b1, (HIDDEN_DIM,), jnp.float32,
                            -1.0 / jnp.sqrt(in1), 1.0 / jnp.sqrt(in1))
    w2 = jax.random.uniform(k_w2, (HIDDEN_DIM, NUM_CLASSES), jnp.float32,
                            -1.0 / jnp.sqrt(HIDDEN_DIM), 1.0 / jnp.sqrt(HIDDEN_DIM))
    b2 = jax.random.uniform(k_b2, (NUM_CLASSES,), jnp.float32,
                            -1.0 / jnp.sqrt(HIDDEN_DIM), 1.0 / jnp.sqrt(HIDDEN_DIM))
    return emb_table, w1, b1, w2, b2


if __name__ == "__main__":
    key = jax.random.PRNGKey(0)
    k_params, k_ids = jax.random.split(key)
    params = init_params(k_params)

    B = 2
    input_ids = jax.random.randint(k_ids, (B, SEQ_LEN), 0, VOCAB_SIZE, jnp.int32)

    forward = jax.jit(qa_forward_pallas)
    logits = forward(input_ids, params)
    jax.block_until_ready(logits)
    assert logits.shape == (B, NUM_CLASSES)

    emb_table, w1, b1, w2, b2 = params

    # Reference 1: kernel-precision math (same bf16 table / bf16 MXU operands, f32 accum).
    tbl, w2_pad, b2_pad = _prepare_tables(params)
    tbl_f = tbl.astype(jnp.float32).reshape(SEQ_LEN, VOCAB_PAD, HIDDEN_DIM)
    h_ref = tbl_f[jnp.arange(SEQ_LEN)[None, :], input_ids, :].sum(axis=1)   # b1 already folded
    h_ref = jnp.maximum(h_ref, 0.0)
    ref_kprec = (jnp.dot(h_ref.astype(jnp.bfloat16), w2_pad,
                         preferred_element_type=jnp.float32) + b2_pad)[:, :NUM_CLASSES]
    assert jnp.allclose(logits, ref_kprec, atol=1e-2, rtol=1e-2)

    # Reference 2: full-f32 PyTorch-equivalent math (loose tolerance covers bf16 rounding).
    x_f32 = jnp.take(emb_table, input_ids, axis=0).reshape(B, -1)
    ref_f32 = jnp.maximum(x_f32 @ w1 + b1[None, :], 0.0) @ w2 + b2[None, :]
    assert jnp.allclose(logits, ref_f32, atol=5e-2, rtol=5e-2)

    print("KERNEL_OK")
</pallas_src>

<mosaic_0001>
module attributes {stable_mosaic.version = 11 : i64} {
  func.func @_fused_qa_kernel(%arg0: i32, %arg1: memref<16x20xi32, #tpu.memory_space<vmem>>, %arg2: memref<2560x128xbf16, #tpu.memory_space<vmem>>, %arg3: memref<128x128xbf16, #tpu.memory_space<vmem>>, %arg4: memref<1x128xf32, #tpu.memory_space<vmem>>, %arg5: memref<16x128xf32, #tpu.memory_space<vmem>>) attributes {dimension_semantics = [#tpu.dimension_semantics<parallel>], iteration_bounds = array<i64: 1>, scalar_prefetch = 0 : i64, scratch_operands = 0 : i64, tpu.core_type = #tpu.core_type<tc>, window_params = [{transform_indices = @transform_0, window_bounds = array<i64: 16, 20>}, {pipeline_mode = #tpu.pipeline_mode<synchronous>, transform_indices = @transform_1, window_bounds = array<i64: 2560, 128>}, {pipeline_mode = #tpu.pipeline_mode<synchronous>, transform_indices = @transform_2, window_bounds = array<i64: 128, 128>}, {pipeline_mode = #tpu.pipeline_mode<synchronous>, transform_indices = @transform_3, window_bounds = array<i64: 1, 128>}, {transform_indices = @transform_4, window_bounds = array<i64: 16, 128>}]} {
    %c0 = arith.constant 0 : index
    %c0_0 = arith.constant 0 : index
    %0 = vector.load %arg1[%c0, %c0_0] : memref<16x20xi32, #tpu.memory_space<vmem>>, vector<16x20xi32>
    %1 = tpu.iota {dimensions = array<i32: 1>} : vector<16x128xi32>
    %2 = vector.extract_strided_slice %0 {offsets = [0, 0], sizes = [16, 1], strides = [1, 1]} : vector<16x20xi32> to vector<16x1xi32>
    %3 = vector.broadcast %2 : vector<16x1xi32> to vector<16x128xi32>
    %4 = arith.cmpi eq, %3, %1 : vector<16x128xi32>
    %5 = arith.extui %4 : vector<16x128xi1> to vector<16x128xi32>
    %6 = arith.sitofp %5 : vector<16x128xi32> to vector<16x128xf32>
    %7 = arith.truncf %6 : vector<16x128xf32> to vector<16x128xbf16>
    %8 = vector.extract_strided_slice %0 {offsets = [0, 1], sizes = [16, 1], strides = [1, 1]} : vector<16x20xi32> to vector<16x1xi32>
    %9 = vector.broadcast %8 : vector<16x1xi32> to vector<16x128xi32>
    %10 = arith.cmpi eq, %9, %1 : vector<16x128xi32>
    %11 = arith.extui %10 : vector<16x128xi1> to vector<16x128xi32>
    %12 = arith.sitofp %11 : vector<16x128xi32> to vector<16x128xf32>
    %13 = arith.truncf %12 : vector<16x128xf32> to vector<16x128xbf16>
    %14 = vector.extract_strided_slice %0 {offsets = [0, 2], sizes = [16, 1], strides = [1, 1]} : vector<16x20xi32> to vector<16x1xi32>
    %15 = vector.broadcast %14 : vector<16x1xi32> to vector<16x128xi32>
    %16 = arith.cmpi eq, %15, %1 : vector<16x128xi32>
    %17 = arith.extui %16 : vector<16x128xi1> to vector<16x128xi32>
    %18 = arith.sitofp %17 : vector<16x128xi32> to vector<16x128xf32>
    %19 = arith.truncf %18 : vector<16x128xf32> to vector<16x128xbf16>
    %20 = vector.extract_strided_slice %0 {offsets = [0, 3], sizes = [16, 1], strides = [1, 1]} : vector<16x20xi32> to vector<16x1xi32>
    %21 = vector.broadcast %20 : vector<16x1xi32> to vector<16x128xi32>
    %22 = arith.cmpi eq, %21, %1 : vector<16x128xi32>
    %23 = arith.extui %22 : vector<16x128xi1> to vector<16x128xi32>
    %24 = arith.sitofp %23 : vector<16x128xi32> to vector<16x128xf32>
    %25 = arith.truncf %24 : vector<16x128xf32> to vector<16x128xbf16>
    %26 = vector.extract_strided_slice %0 {offsets = [0, 4], sizes = [16, 1], strides = [1, 1]} : vector<16x20xi32> to vector<16x1xi32>
    %27 = vector.broadcast %26 : vector<16x1xi32> to vector<16x128xi32>
    %28 = arith.cmpi eq, %27, %1 : vector<16x128xi32>
    %29 = arith.extui %28 : vector<16x128xi1> to vector<16x128xi32>
    %30 = arith.sitofp %29 : vector<16x128xi32> to vector<16x128xf32>
    %31 = arith.truncf %30 : vector<16x128xf32> to vector<16x128xbf16>
    %32 = vector.extract_strided_slice %0 {offsets = [0, 5], sizes = [16, 1], strides = [1, 1]} : vector<16x20xi32> to vector<16x1xi32>
    %33 = vector.broadcast %32 : vector<16x1xi32> to vector<16x128xi32>
    %34 = arith.cmpi eq, %33, %1 : vector<16x128xi32>
    %35 = arith.extui %34 : vector<16x128xi1> to vector<16x128xi32>
    %36 = arith.sitofp %35 : vector<16x128xi32> to vector<16x128xf32>
    %37 = arith.truncf %36 : vector<16x128xf32> to vector<16x128xbf16>
    %38 = vector.extract_strided_slice %0 {offsets = [0, 6], sizes = [16, 1], strides = [1, 1]} : vector<16x20xi32> to vector<16x1xi32>
    %39 = vector.broadcast %38 : vector<16x1xi32> to vector<16x128xi32>
    %40 = arith.cmpi eq, %39, %1 : vector<16x128xi32>
    %41 = arith.extui %40 : vector<16x128xi1> to vector<16x128xi32>
    %42 = arith.sitofp %41 : vector<16x128xi32> to vector<16x128xf32>
    %43 = arith.truncf %42 : vector<16x128xf32> to vector<16x128xbf16>
    %44 = vector.extract_strided_slice %0 {offsets = [0, 7], sizes = [16, 1], strides = [1, 1]} : vector<16x20xi32> to vector<16x1xi32>
    %45 = vector.broadcast %44 : vector<16x1xi32> to vector<16x128xi32>
    %46 = arith.cmpi eq, %45, %1 : vector<16x128xi32>
    %47 = arith.extui %46 : vector<16x128xi1> to vector<16x128xi32>
    %48 = arith.sitofp %47 : vector<16x128xi32> to vector<16x128xf32>
    %49 = arith.truncf %48 : vector<16x128xf32> to vector<16x128xbf16>
    %50 = vector.extract_strided_slice %0 {offsets = [0, 8], sizes = [16, 1], strides = [1, 1]} : vector<16x20xi32> to vector<16x1xi32>
    %51 = vector.broadcast %50 : vector<16x1xi32> to vector<16x128xi32>
    %52 = arith.cmpi eq, %51, %1 : vector<16x128xi32>
    %53 = arith.extui %52 : vector<16x128xi1> to vector<16x128xi32>
    %54 = arith.sitofp %53 : vector<16x128xi32> to vector<16x128xf32>
    %55 = arith.truncf %54 : vector<16x128xf32> to vector<16x128xbf16>
    %56 = vector.extract_strided_slice %0 {offsets = [0, 9], sizes = [16, 1], strides = [1, 1]} : vector<16x20xi32> to vector<16x1xi32>
    %57 = vector.broadcast %56 : vector<16x1xi32> to vector<16x128xi32>
    %58 = arith.cmpi eq, %57, %1 : vector<16x128xi32>
    %59 = arith.extui %58 : vector<16x128xi1> to vector<16x128xi32>
    %60 = arith.sitofp %59 : vector<16x128xi32> to vector<16x128xf32>
    %61 = arith.truncf %60 : vector<16x128xf32> to vector<16x128xbf16>
    %62 = vector.extract_strided_slice %0 {offsets = [0, 10], sizes = [16, 1], strides = [1, 1]} : vector<16x20xi32> to vector<16x1xi32>
    %63 = vector.broadcast %62 : vector<16x1xi32> to vector<16x128xi32>
    %64 = arith.cmpi eq, %63, %1 : vector<16x128xi32>
    %65 = arith.extui %64 : vector<16x128xi1> to vector<16x128xi32>
    %66 = arith.sitofp %65 : vector<16x128xi32> to vector<16x128xf32>
    %67 = arith.truncf %66 : vector<16x128xf32> to vector<16x128xbf16>
    %68 = vector.extract_strided_slice %0 {offsets = [0, 11], sizes = [16, 1], strides = [1, 1]} : vector<16x20xi32> to vector<16x1xi32>
    %69 = vector.broadcast %68 : vector<16x1xi32> to vector<16x128xi32>
    %70 = arith.cmpi eq, %69, %1 : vector<16x128xi32>
    %71 = arith.extui %70 : vector<16x128xi1> to vector<16x128xi32>
    %72 = arith.sitofp %71 : vector<16x128xi32> to vector<16x128xf32>
    %73 = arith.truncf %72 : vector<16x128xf32> to vector<16x128xbf16>
    %74 = vector.extract_strided_slice %0 {offsets = [0, 12], sizes = [16, 1], strides = [1, 1]} : vector<16x20xi32> to vector<16x1xi32>
    %75 = vector.broadcast %74 : vector<16x1xi32> to vector<16x128xi32>
    %76 = arith.cmpi eq, %75, %1 : vector<16x128xi32>
    %77 = arith.extui %76 : vector<16x128xi1> to vector<16x128xi32>
    %78 = arith.sitofp %77 : vector<16x128xi32> to vector<16x128xf32>
    %79 = arith.truncf %78 : vector<16x128xf32> to vector<16x128xbf16>
    %80 = vector.extract_strided_slice %0 {offsets = [0, 13], sizes = [16, 1], strides = [1, 1]} : vector<16x20xi32> to vector<16x1xi32>
    %81 = vector.broadcast %80 : vector<16x1xi32> to vector<16x128xi32>
    %82 = arith.cmpi eq, %81, %1 : vector<16x128xi32>
    %83 = arith.extui %82 : vector<16x128xi1> to vector<16x128xi32>
    %84 = arith.sitofp %83 : vector<16x128xi32> to vector<16x128xf32>
    %85 = arith.truncf %84 : vector<16x128xf32> to vector<16x128xbf16>
    %86 = vector.extract_strided_slice %0 {offsets = [0, 14], sizes = [16, 1], strides = [1, 1]} : vector<16x20xi32> to vector<16x1xi32>
    %87 = vector.broadcast %86 : vector<16x1xi32> to vector<16x128xi32>
    %88 = arith.cmpi eq, %87, %1 : vector<16x128xi32>
    %89 = arith.extui %88 : vector<16x128xi1> to vector<16x128xi32>
    %90 = arith.sitofp %89 : vector<16x128xi32> to vector<16x128xf32>
    %91 = arith.truncf %90 : vector<16x128xf32> to vector<16x128xbf16>
    %92 = vector.extract_strided_slice %0 {offsets = [0, 15], sizes = [16, 1], strides = [1, 1]} : vector<16x20xi32> to vector<16x1xi32>
    %93 = vector.broadcast %92 : vector<16x1xi32> to vector<16x128xi32>
    %94 = arith.cmpi eq, %93, %1 : vector<16x128xi32>
    %95 = arith.extui %94 : vector<16x128xi1> to vector<16x128xi32>
    %96 = arith.sitofp %95 : vector<16x128xi32> to vector<16x128xf32>
    %97 = arith.truncf %96 : vector<16x128xf32> to vector<16x128xbf16>
    %98 = vector.extract_strided_slice %0 {offsets = [0, 16], sizes = [16, 1], strides = [1, 1]} : vector<16x20xi32> to vector<16x1xi32>
    %99 = vector.broadcast %98 : vector<16x1xi32> to vector<16x128xi32>
    %100 = arith.cmpi eq, %99, %1 : vector<16x128xi32>
    %101 = arith.extui %100 : vector<16x128xi1> to vector<16x128xi32>
    %102 = arith.sitofp %101 : vector<16x128xi32> to vector<16x128xf32>
    %103 = arith.truncf %102 : vector<16x128xf32> to vector<16x128xbf16>
    %104 = vector.extract_strided_slice %0 {offsets = [0, 17], sizes = [16, 1], strides = [1, 1]} : vector<16x20xi32> to vector<16x1xi32>
    %105 = vector.broadcast %104 : vector<16x1xi32> to vector<16x128xi32>
    %106 = arith.cmpi eq, %105, %1 : vector<16x128xi32>
    %107 = arith.extui %106 : vector<16x128xi1> to vector<16x128xi32>
    %108 = arith.sitofp %107 : vector<16x128xi32> to vector<16x128xf32>
    %109 = arith.truncf %108 : vector<16x128xf32> to vector<16x128xbf16>
    %110 = vector.extract_strided_slice %0 {offsets = [0, 18], sizes = [16, 1], strides = [1, 1]} : vector<16x20xi32> to vector<16x1xi32>
    %111 = vector.broadcast %110 : vector<16x1xi32> to vector<16x128xi32>
    %112 = arith.cmpi eq, %111, %1 : vector<16x128xi32>
    %113 = arith.extui %112 : vector<16x128xi1> to vector<16x128xi32>
    %114 = arith.sitofp %113 : vector<16x128xi32> to vector<16x128xf32>
    %115 = arith.truncf %114 : vector<16x128xf32> to vector<16x128xbf16>
    %116 = vector.extract_strided_slice %0 {offsets = [0, 19], sizes = [16, 1], strides = [1, 1]} : vector<16x20xi32> to vector<16x1xi32>
    %117 = vector.broadcast %116 : vector<16x1xi32> to vector<16x128xi32>
    %118 = arith.cmpi eq, %117, %1 : vector<16x128xi32>
    %119 = arith.extui %118 : vector<16x128xi1> to vector<16x128xi32>
    %120 = arith.sitofp %119 : vector<16x128xi32> to vector<16x128xf32>
    %121 = arith.truncf %120 : vector<16x128xf32> to vector<16x128xbf16>
    %122 = tpu.concatenate %7, %13, %19, %25, %31, %37, %43, %49, %55, %61, %67, %73, %79, %85, %91, %97 in 1 : vector<16x128xbf16>, vector<16x128xbf16>, vector<16x128xbf16>, vector<16x128xbf16>, vector<16x128xbf16>, vector<16x128xbf16>, vector<16x128xbf16>, vector<16x128xbf16>, vector<16x128xbf16>, vector<16x128xbf16>, vector<16x128xbf16>, vector<16x128xbf16>, vector<16x128xbf16>, vector<16x128xbf16>, vector<16x128xbf16>, vector<16x128xbf16> -> vector<16x2048xbf16>
    %123 = tpu.concatenate %103, %109, %115, %121 in 1 : vector<16x128xbf16>, vector<16x128xbf16>, vector<16x128xbf16>, vector<16x128xbf16> -> vector<16x512xbf16>
    %124 = tpu.concatenate %122, %123 in 1 : vector<16x2048xbf16>, vector<16x512xbf16> -> vector<16x2560xbf16>
    %c0_1 = arith.constant 0 : index
    %c0_2 = arith.constant 0 : index
    %125 = vector.load %arg2[%c0_1, %c0_2] : memref<2560x128xbf16, #tpu.memory_space<vmem>>, vector<2560x128xbf16>
    %cst = arith.constant dense<0.000000e+00> : vector<16x128xf32>
    %126 = tpu.matmul %124, %125, %cst {dimension_numbers = #tpu.dot_dimension_numbers<[1], [0], [0], [1], [0, 0, 1, 1], [], []>} : vector<16x2560xbf16>, vector<2560x128xbf16>, vector<16x128xf32> -> vector<16x128xf32>
    %cst_3 = arith.constant 0.000000e+00 : f32
    %127 = vector.broadcast %cst_3 : f32 to vector<16x128xf32>
    %128 = arith.maximumf %126, %127 : vector<16x128xf32>
    %129 = arith.truncf %128 : vector<16x128xf32> to vector<16x128xbf16>
    %c0_4 = arith.constant 0 : index
    %c0_5 = arith.constant 0 : index
    %130 = vector.load %arg3[%c0_4, %c0_5] : memref<128x128xbf16, #tpu.memory_space<vmem>>, vector<128x128xbf16>
    %cst_6 = arith.constant dense<0.000000e+00> : vector<16x128xf32>
    %131 = tpu.matmul %129, %130, %cst_6 {dimension_numbers = #tpu.dot_dimension_numbers<[1], [0], [0], [1], [0, 0, 1, 1], [], []>} : vector<16x128xbf16>, vector<128x128xbf16>, vector<16x128xf32> -> vector<16x128xf32>
    %c0_7 = arith.constant 0 : index
    %c0_8 = arith.constant 0 : index
    %132 = vector.load %arg4[%c0_7, %c0_8] : memref<1x128xf32, #tpu.memory_space<vmem>>, vector<1x128xf32>
    %133 = vector.broadcast %132 : vector<1x128xf32> to vector<16x128xf32>
    %134 = arith.addf %131, %133 : vector<16x128xf32>
    %c0_9 = arith.constant 0 : index
    %c0_10 = arith.constant 0 : index
    %135 = vector.load %arg5[%c0_9, %c0_10] : memref<16x128xf32, #tpu.memory_space<vmem>>, vector<16x128xf32>
    tpu.vector_store %arg5[%c0_9, %c0_10], %134 {strides = array<i32>} : memref<16x128xf32, #tpu.memory_space<vmem>>, vector<16x128xf32>,
    return
  }
  func.func @transform_0(%arg0: i32) -> (i32, i32) {
    %c0_i32 = arith.constant 0 : i32
    %c0_i32_0 = arith.constant 0 : i32
    return %arg0, %c0_i32 : i32, i32
  }
  func.func @transform_1(%arg0: i32) -> (i32, i32) {
    %c0_i32 = arith.constant 0 : i32
    %c0_i32_0 = arith.constant 0 : i32
    %c0_i32_1 = arith.constant 0 : i32
    return %c0_i32, %c0_i32_0 : i32, i32
  }
  func.func @transform_2(%arg0: i32) -> (i32, i32) {
    %c0_i32 = arith.constant 0 : i32
    %c0_i32_0 = arith.constant 0 : i32
    %c0_i32_1 = arith.constant 0 : i32
    return %c0_i32, %c0_i32_0 : i32, i32
  }
  func.func @transform_3(%arg0: i32) -> (i32, i32) {
    %c0_i32 = arith.constant 0 : i32
    %c0_i32_0 = arith.constant 0 : i32
    %c0_i32_1 = arith.constant 0 : i32
    return %c0_i32, %c0_i32_0 : i32, i32
  }
  func.func @transform_4(%arg0: i32) -> (i32, i32) {
    %c0_i32 = arith.constant 0 : i32
    %c0_i32_0 = arith.constant 0 : i32
    return %arg0, %c0_i32 : i32, i32
  }
}

</mosaic_0001>

<bundles_post_ra>
// kernel: qa_forward_pallas.1
= control target key start
LH: loop header
LB: loop body
LE: loop exit
PB: predicated region body
PF: predicated region fallthrough
CT: control target
= control target key end

     0   :  { %v3011_v0 = vmov 2   ;;  %v3012_v1 = vmov 0   ;;  %v3013_v3 = vmov 3   ;;  %v3014_v5 = vmov 1   ;;  %s3732_s0 = inlined_call_operand.vmem [shape: s32[16,20], index: 0, kind: input, shape index: {}]   ;;  %s3733_s1 = inlined_call_operand.vmem [shape: bf16[2560,128], index: 1, kind: input, shape index: {}]   ;;  %s3734_s3 = inlined_call_operand.vmem [shape: f32[1,128], index: 3, kind: input, shape index: {}]   ;;  %s3735_s2 = inlined_call_operand.vmem [shape: bf16[128,128], index: 2, kind: input, shape index: {}]   ;;  %s3736_s4 = inlined_call_operand.vmem [shape: f32[16,128], index: 4, kind: output, shape index: {}]  }
   0x1   :  { %2973 = vset.pattern.permute.xlu0 %v3011_v0  ;;  %2974 = vset.pattern.permute.xlu1 %v3012_v1  ;;  %v3060_v2 = vld [vmem:[%s3732_s0] sm:$0xff]  ;;  %v3068_v4 = vld [vmem:[%s3732_s0 + $0x8] sm:$0xff]  ;;  %v3015_v6 = vmov 6   ;;  %v3016_v7 = vmov 4   ;;  %v3017_v8 = vmov 7   ;;  %v3018_v9 = vmov 10  }
   0x2   :  { %22 = vperm.xlu1 %2974, %v3060_v2   ;;  %50 = vperm.xlu0 %2973, %v3060_v2   ;;  %v3019_v10 = vmov 5   ;;  %v3020_v11 = vmov 11   ;;  %v2807_v12 = vld [vmem:[%s3733_s1 + $0xb8] sm:$0xff]  ;;  %v2806_v13 = vld [vmem:[%s3733_s1 + $0xb0] sm:$0xff]  ;;  %v3021_v14 = vmov 12   ;;  %v3022_v15 = vmov 8  }
   0x3   :  { %2975 = vset.pattern.permute.xlu2 %v3013_v3  ;;  %1729 = vmatpush.bf16.msra.mxu2 %v2807_v12  ;;  %v2791_v16 = vld [vmem:[%s3733_s1 + $0x38] sm:$0xff]  ;;  %v2805_v17 = vld [vmem:[%s3733_s1 + $0xa8] sm:$0xff]  ;;  %v2790_v20 = vld [vmem:[%s3733_s1 + $0x30] sm:$0xff]  ;;  %v3023_v22 = vmov 13   ;;  %v3024_v31 = vmov 9   ;;  %v3025_v41 = vmov 14   ;;  %v19_v49 = vlaneseq }
   0x4   :  { %64 = vperm.xlu2 %2975, %v3060_v2   ;;  %1701 = vmatpush.bf16.msra.mxu0 %v2791_v16  ;;  %v2815_v18 = vld [vmem:[%s3733_s1 + $0xf8] sm:$0xff]  ;;  %v2804_v21 = vld [vmem:[%s3733_s1 + $0xa0] sm:$0xff]  ;;  %v2814_v23 = vld [vmem:[%s3733_s1 + $0xf0] sm:$0xff]  ;;  %v3026_v55 = vmov 15   ;;  %v3027_v60 = vmov 19   ;;  %v3028_v1 = vmov 0.0  }
   0x5   :  { %v2799_v19 = vld [vmem:[%s3733_s1 + $0x78] sm:$0xff]  ;;  %1743 = vmatpush.bf16.msra.mxu3 %v2815_v18  ;;  %v2789_v24 = vld [vmem:[%s3733_s1 + $0x28] sm:$0xff]  ;;  %v2798_v26 = vld [vmem:[%s3733_s1 + $0x70] sm:$0xff]  ;;  %v3207_v54 = vand.u32 127, %v19_v49 }
   0x6   :  { %1715 = vmatpush.bf16.msra.mxu1 %v2799_v19  ;;  %v2803_v25 = vld [vmem:[%s3733_s1 + $0x98] sm:$0xff]  ;;  %v2813_v27 = vld [vmem:[%s3733_s1 + $0xe8] sm:$0xff]  ;;  %v2788_v28 = vld [vmem:[%s3733_s1 + $0x20] sm:$0xff] }
   0x7   :  { %1730 = vmatpush.bf16.msra.mxu2 %v2806_v13  ;;  %v2802_v29 = vld [vmem:[%s3733_s1 + $0x90] sm:$0xff]  ;;  %v2797_v30 = vld [vmem:[%s3733_s1 + $0x68] sm:$0xff]  ;;  %v2812_v32 = vld [vmem:[%s3733_s1 + $0xe0] sm:$0xff] }
   0x8   :  { %1702 = vmatpush.bf16.msra.mxu0 %v2790_v20  ;;  %v2787_v33 = vld [vmem:[%s3733_s1 + $0x18] sm:$0xff]  ;;  %v2801_v34 = vld [vmem:[%s3733_s1 + $0x88] sm:$0xff]  ;;  %v2796_v35 = vld [vmem:[%s3733_s1 + $0x60] sm:$0xff]  ;;  %v3029_v20 = vmov 18  }
   0x9   :  { %1744 = vmatpush.bf16.msra.mxu3 %v2814_v23  ;;  %v2786_v36 = vld [vmem:[%s3733_s1 + $0x10] sm:$0xff]  ;;  %v2811_v37 = vld [vmem:[%s3733_s1 + $0xd8] sm:$0xff]  ;;  %v2800_v38 = vld [vmem:[%s3733_s1 + $0x80] sm:$0xff] }
   0xa   :  { %25 = vperm.xlu1 %2974, %v3068_v4   ;;  %53 = vperm.xlu0 %2973, %v3068_v4   ;;  %v2795_v39 = vld [vmem:[%s3733_s1 + $0x58] sm:$0xff]  ;;  %v2785_v42 = vld [vmem:[%s3733_s1 + $0x8] sm:$0xff]  ;;  %v2810_v43 = vld [vmem:[%s3733_s1 + $0xd0] sm:$0xff] }
   0xb   :  { %1731 = vmatpush.bf16.msra.mxu2 %v2805_v17  ;;  %1716 = vmatpush.bf16.msra.mxu1 %v2798_v26  ;;  %v2839_v40 = vld [vmem:[%s3733_s1 + $0x1b8] sm:$0xff]  ;;  %v2794_v44 = vld [vmem:[%s3733_s1 + $0x50] sm:$0xff]  ;;  %v2784_v46 = vld [vmem:[%s3733_s1] sm:$0xff] }
   0xc   :  { %67 = vperm.xlu2 %2975, %v3068_v4   ;;  %1703 = vmatpush.bf16.msra.mxu0 %v2789_v24  ;;  %v2838_v45 = vld [vmem:[%s3733_s1 + $0x1b0] sm:$0xff]  ;;  %v2809_v47 = vld [vmem:[%s3733_s1 + $0xc8] sm:$0xff]  ;;  %v2823_v48 = vld [vmem:[%s3733_s1 + $0x138] sm:$0xff] }
   0xd   :  { %1745 = vmatpush.bf16.msra.mxu3 %v2813_v27  ;;  %v2793_v50 = vld [vmem:[%s3733_s1 + $0x48] sm:$0xff]  ;;  %v2808_v52 = vld [vmem:[%s3733_s1 + $0xc0] sm:$0xff]  ;;  %v2822_v53 = vld [vmem:[%s3733_s1 + $0x130] sm:$0xff] }
   0xe   :  { %v2837_v51 = vld [vmem:[%s3733_s1 + $0x1a8] sm:$0xff]  ;;  %v2792_v56 = vld [vmem:[%s3733_s1 + $0x40] sm:$0xff]  ;;  %v2831_v58 = vld [vmem:[%s3733_s1 + $0x178] sm:$0xff] }
   0xf   :  { %1732 = vmatpush.bf16.msra.mxu2 %v2804_v21  ;;  %1717 = vmatpush.bf16.msra.mxu1 %v2797_v30  ;;  %v2836_v57 = vld [vmem:[%s3733_s1 + $0x1a0] sm:$0xff]  ;;  %v2821_v61 = vld [vmem:[%s3733_s1 + $0x128] sm:$0xff]  ;;  %v2847_v62 = vld [vmem:[%s3733_s1 + $0x1f8] sm:$0xff] }
  0x10   :  { %1704 = vmatpush.bf16.msra.mxu0 %v2788_v28  ;;  %v2835_v63 = vld [vmem:[%s3733_s1 + $0x198] sm:$0xff]  ;;  %v2830_v0 = vld [vmem:[%s3733_s1 + $0x170] sm:$0xff]  ;;  %v2845_v12 = vld [vmem:[%s3733_s1 + $0x1e8] sm:$0xff] }
  0x11   :  { %1746 = vmatpush.bf16.msra.mxu3 %v2812_v32  ;;  %v2828_v17 = vld [vmem:[%s3733_s1 + $0x160] sm:$0xff]  ;;  %v2818_v18 = vld [vmem:[%s3733_s1 + $0x110] sm:$0xff]  ;;  %v2827_v24 = vld [vmem:[%s3733_s1 + $0x158] sm:$0xff] }
  0x12   :  { %2977 = vset.pattern.permute.xlu1 %v3014_v5  ;;  %2976 = vset.pattern.permute.xlu0 %v3014_v5  ;;  %v2820_v5 = vld [vmem:[%s3733_s1 + $0x120] sm:$0xff]  ;;  %v2843_v27 = vld [vmem:[%s3733_s1 + $0x1d8] sm:$0xff]  ;;  %v2826_v28 = vld [vmem:[%s3733_s1 + $0x150] sm:$0xff] }
  0x13   :  { %39 = vperm.xlu1 %2977, %v3068_v4   ;;  %36 = vperm.xlu0 %2976, %v3060_v2   ;;  %v2844_v21 = vld [vmem:[%s3733_s1 + $0x1e0] sm:$0xff]  ;;  %v2842_v32 = vld [vmem:[%s3733_s1 + $0x1d0] sm:$0xff] }
  0x14   :  { %2978 = vset.pattern.permute.xlu2 %v3015_v6  ;;  %1733 = vmatpush.bf16.msra.mxu2 %v2803_v25  ;;  %v2817_v25 = vld [vmem:[%s3733_s1 + $0x108] sm:$0xff] }
  0x15   :  { %106 = vperm.xlu2 %2978, %v3060_v2   ;;  %1705 = vmatpush.bf16.msra.mxu0 %v2787_v33  ;;  %v3030_v33 = vmov 16  }
  0x16   :  { %1718 = vmatpush.bf16.msra.mxu1 %v2796_v35  ;;  %1747 = vmatpush.bf16.msra.mxu3 %v2811_v37  ;;  %v2841_v37 = vld [vmem:[%s3733_s1 + $0x1c8] sm:$0xff] }
  0x18   :  { %1734 = vmatpush.bf16.msra.mxu2 %v2802_v29  ;;  %v2816_v29 = vld [vmem:[%s3733_s1 + $0x100] sm:$0xff] }
  0x19   :  { %1706 = vmatpush.bf16.msra.mxu0 %v2786_v36 }
  0x1a   :  { %1719 = vmatpush.bf16.msra.mxu1 %v2795_v39  ;;  %1748 = vmatpush.bf16.msra.mxu3 %v2810_v43  ;;  %v2840_v43 = vld [vmem:[%s3733_s1 + $0x1c0] sm:$0xff] }
  0x1b   :  { %2979 = vset.pattern.permute.xlu1 %v3015_v6  ;;  %2981 = vset.pattern.permute.xlu0 %v3016_v7  ;;  %v2846_v6 = vld [vmem:[%s3733_s1 + $0x1f0] sm:$0xff] }
  0x1c   :  { %109 = vperm.xlu1 %2979, %v3068_v4   ;;  %81 = vperm.xlu0 %2981, %v3068_v4  }
  0x1d   :  { %2980 = vset.pattern.permute.xlu2 %v3016_v7  ;;  %1735 = vmatpush.bf16.msra.mxu2 %v2801_v34  ;;  %v2834_v7 = vld [vmem:[%s3733_s1 + $0x190] sm:$0xff]  ;;  %v2825_v34 = vld [vmem:[%s3733_s1 + $0x148] sm:$0xff] }
  0x1e   :  { %78 = vperm.xlu2 %2980, %v3060_v2   ;;  %1707 = vmatpush.bf16.msra.mxu0 %v2785_v42 }
  0x1f   :  { %1720 = vmatpush.bf16.msra.mxu1 %v2794_v44  ;;  %1749 = vmatpush.bf16.msra.mxu3 %v2809_v47 }
  0x21   :  { %1736 = vmatpush.bf16.msra.mxu2 %v2800_v38  ;;  %v2824_v38 = vld [vmem:[%s3733_s1 + $0x140] sm:$0xff] }
  0x22   :  { %1708 = vmatpush.bf16.msra.mxu0 %v2784_v46 }
  0x23   :  { %1721 = vmatpush.bf16.msra.mxu1 %v2793_v50  ;;  %1750 = vmatpush.bf16.msra.mxu3 %v2808_v52 }
  0x24   :  { %2982 = vset.pattern.permute.xlu1 %v3017_v8  ;;  %2986 = vset.pattern.permute.xlu0 %v3018_v9 }
  0x25   :  { %120 = vperm.xlu1 %2982, %v3060_v2   ;;  %162 = vperm.xlu0 %2986, %v3060_v2  }
  0x26   :  { %2983 = vset.pattern.permute.xlu2 %v3017_v8  ;;  %1785 = vmatpush.bf16.msrb.mxu2 %v2839_v40 }
  0x27   :  { %123 = vperm.xlu2 %2983, %v3068_v4   ;;  %1757 = vmatpush.bf16.msrb.mxu0 %v2823_v48 }
  0x28   :  { %1722 = vmatpush.bf16.msra.mxu1 %v2792_v56  ;;  %1799 = vmatpush.bf16.msrb.mxu3 %v2847_v62 }
  0x2a   :  { %1786 = vmatpush.bf16.msrb.mxu2 %v2838_v45  ;;  %v2879_v45 = vld [vmem:[%s3733_s1 + $0x2f8] sm:$0xff] }
  0x2b   :  { %1758 = vmatpush.bf16.msrb.mxu0 %v2822_v53 }
  0x2c   :  { %1771 = vmatpush.bf16.msrb.mxu1 %v2831_v58  ;;  %1800 = vmatpush.bf16.msrb.mxu3 %v2846_v6  ;;  %v2855_v58 = vld [vmem:[%s3733_s1 + $0x238] sm:$0xff]  ;;  %v2877_v6 = vld [vmem:[%s3733_s1 + $0x2e8] sm:$0xff] }
  0x2d   :  { %2984 = vset.pattern.permute.xlu1 %v3019_v10  ;;  %2991 = vset.pattern.permute.xlu0 %v3020_v11 }
  0x2e   :  { %92 = vperm.xlu1 %2984, %v3060_v2   ;;  %179 = vperm.xlu0 %2991, %v3068_v4  }
  0x2f   :  { %2985 = vset.pattern.permute.xlu2 %v3019_v10  ;;  %1787 = vmatpush.bf16.msrb.mxu2 %v2837_v51  ;;  %v3031_v51 = vmov 17  }
  0x30   :  { %95 = vperm.xlu2 %2985, %v3068_v4   ;;  %1759 = vmatpush.bf16.msrb.mxu0 %v2821_v61  ;;  %v2878_v61 = vld [vmem:[%s3733_s1 + $0x2f0] sm:$0xff] }
  0x31   :  { %1772 = vmatpush.bf16.msrb.mxu1 %v2830_v0  ;;  %1801 = vmatpush.bf16.msrb.mxu3 %v2845_v12  ;;  %v2854_v0 = vld [vmem:[%s3733_s1 + $0x230] sm:$0xff] }
  0x33   :  { %1788 = vmatpush.bf16.msrb.mxu2 %v2836_v57  ;;  %v2871_v57 = vld [vmem:[%s3733_s1 + $0x2b8] sm:$0xff] }
  0x34   :  { %1760 = vmatpush.bf16.msrb.mxu0 %v2820_v5 }
  0x35   :  { %1802 = vmatpush.bf16.msrb.mxu3 %v2844_v21 }
  0x36   :  { %2987 = vset.pattern.permute.xlu1 %v3018_v9  ;;  %2996 = vset.pattern.permute.xlu0 %v3021_v14  ;;  %v2829_v9 = vld [vmem:[%s3733_s1 + $0x168] sm:$0xff] }
  0x37   :  { %165 = vperm.xlu1 %2987, %v3068_v4   ;;  %190 = vperm.xlu0 %2996, %v3060_v2  }
  0x38   :  { %2988 = vset.pattern.permute.xlu2 %v3022_v15  ;;  %1789 = vmatpush.bf16.msrb.mxu2 %v2835_v63 }
  0x39   :  { %134 = vperm.xlu2 %2988, %v3060_v2   ;;  %1773 = vmatpush.bf16.msrb.mxu1 %v2829_v9 }
  0x3a   :  { %1803 = vmatpush.bf16.msrb.mxu3 %v2843_v27  ;;  %v2875_v27 = vld [vmem:[%s3733_s1 + $0x2d8] sm:$0xff] }
  0x3c   :  { %1790 = vmatpush.bf16.msrb.mxu2 %v2834_v7 }
  0x3d   :  { %1774 = vmatpush.bf16.msrb.mxu1 %v2828_v17  ;;  %v2876_v17 = vld [vmem:[%s3733_s1 + $0x2e0] sm:$0xff] }
  0x3e   :  { %1804 = vmatpush.bf16.msrb.mxu3 %v2842_v32  ;;  %v2867_v32 = vld [vmem:[%s3733_s1 + $0x298] sm:$0xff] }
  0x3f   :  { %2989 = vset.pattern.permute.xlu1 %v3022_v15  ;;  %3001 = vset.pattern.permute.xlu0 %v3023_v22 }
  0x40   :  { %137 = vperm.xlu1 %2989, %v3068_v4   ;;  %207 = vperm.xlu0 %3001, %v3068_v4  }
  0x41   :  { %2990 = vset.pattern.permute.xlu2 %v3020_v11  ;;  %v2819_v11 = vld [vmem:[%s3733_s1 + $0x118] sm:$0xff]  ;;  %1775 = vmatpush.bf16.msrb.mxu1 %v2827_v24  ;;  %v2852_v24 = vld [vmem:[%s3733_s1 + $0x220] sm:$0xff] }
  0x42   :  { %176 = vperm.xlu2 %2990, %v3060_v2   ;;  %1761 = vmatpush.bf16.msrb.mxu0 %v2819_v11 }
  0x43   :  { %1805 = vmatpush.bf16.msrb.mxu3 %v2841_v37  ;;  %v2861_v37 = vld [vmem:[%s3733_s1 + $0x268] sm:$0xff] }
  0x45   :  { %1776 = vmatpush.bf16.msrb.mxu1 %v2826_v28 }
  0x46   :  { %1762 = vmatpush.bf16.msrb.mxu0 %v2818_v18 }
  0x47   :  { %1806 = vmatpush.bf16.msrb.mxu3 %v2840_v43  ;;  %v2866_v43 = vld [vmem:[%s3733_s1 + $0x290] sm:$0xff] }
  0x48   :  { %2992 = vset.pattern.permute.xlu1 %v3024_v31  ;;  %3006 = vset.pattern.permute.xlu0 %v3027_v60 }
  0x49   :  { %148 = vperm.xlu1 %2992, %v3060_v2   ;;  %288 = vperm.xlu0 %3006, %v3060_v2  }
  0x4a   :  { %2993 = vset.pattern.permute.xlu2 %v3024_v31  ;;  %1763 = vmatpush.bf16.msrb.mxu0 %v2817_v25 }
  0x4b   :  { %151 = vperm.xlu2 %2993, %v3068_v4   ;;  %1777 = vmatpush.bf16.msrb.mxu1 %v2825_v34 }
  0x4e   :  { %1764 = vmatpush.bf16.msrb.mxu0 %v2816_v29 }
  0x4f   :  { %1778 = vmatpush.bf16.msrb.mxu1 %v2824_v38  ;;  %v2851_v38 = vld [vmem:[%s3733_s1 + $0x218] sm:$0xff] }
  0x51   :  { %2994 = vset.pattern.permute.xlu1 %v3025_v41 }
  0x52   :  { %218 = vperm.xlu1 %2994, %v3060_v2  }
  0x53   :  { %2995 = vset.pattern.permute.xlu2 %v3025_v41 }
  0x54   :  { %221 = vperm.xlu2 %2995, %v3068_v4  }
  0x5a   :  { %2997 = vset.pattern.permute.xlu1 %v3021_v14  ;;  %v2833_v14 = vld [vmem:[%s3733_s1 + $0x188] sm:$0xff] }
  0x5b   :  { %193 = vperm.xlu1 %2997, %v3068_v4   ;;  %1791 = vmatpush.bf16.msrb.mxu2 %v2833_v14 }
  0x5c   :  { %2998 = vset.pattern.permute.xlu2 %v3026_v55 }
  0x5d   :  { %232 = vperm.xlu2 %2998, %v3060_v2  }
  0x5e   :  { %v65_v59 = vpop.permute.xlu2 %64 }
  0x5f   :  { %vm69_vm0 = vcmp.eq.s32.totalorder %v65_v59, %v3207_v54 }
  0x60   :  { %v2078_v3 = vsel %vm69_vm0, 1.0, %v3028_v1 }
  0x61   :  { %v75_v8 = vpack.c.bf16 %v2078_v3, %v2078_v3 }
  0x63   :  { %2999 = vset.pattern.permute.xlu1 %v3026_v55  ;;  %v321_v15 = vunpack.c.l.b16 %v75_v8 }
  0x64   :  { %235 = vperm.xlu1 %2999, %v3068_v4  }
  0x65   :  { %3000 = vset.pattern.permute.xlu2 %v3023_v22  ;;  %v2832_v22 = vld [vmem:[%s3733_s1 + $0x180] sm:$0xff] }
  0x66   :  { %204 = vperm.xlu2 %3000, %v3060_v2   ;;  %v68_v10 = vpop.permute.xlu2 %67  ;;  %1792 = vmatpush.bf16.msrb.mxu2 %v2832_v22  ;;  %v2868_v22 = vld [vmem:[%s3733_s1 + $0x2a0] sm:$0xff] }
  0x67   :  { %vm70_vm1 = vcmp.eq.s32.totalorder %v68_v10, %v3207_v54 }
  0x68   :  { %v2079_v13 = vsel %vm70_vm1, 1.0, %v3028_v1 }
  0x69   :  { %v76_v16 = vpack.c.bf16 %v2079_v13, %v2079_v13  ;;  %v2869_v13 = vld [vmem:[%s3733_s1 + $0x2a8] sm:$0xff] }
  0x6b   :  { %v322_v19 = vunpack.c.l.b16 %v76_v16 }
  0x6c   :  { %3002 = vset.pattern.permute.xlu1 %v3029_v20 }
  0x6d   :  { %274 = vperm.xlu1 %3002, %v3060_v2   ;;  %v323_v23 = vpack.c.b16 %v322_v19, %v321_v15  ;;  %v2863_v15 = vld [vmem:[%s3733_s1 + $0x278] sm:$0xff] }
  0x6e   :  { %3003 = vset.pattern.permute.xlu2 %v3029_v20 }
  0x6f   :  { %1751 = vmatmul.bf16.vlgmr.msra.gmra.mxu3 %v323_v23  ;;  %277 = vperm.xlu2 %3003, %v3068_v4   ;;  %v3281_v26 = vpop.permute.xlu2 %106  ;;  %v2862_v23 = vld [vmem:[%s3733_s1 + $0x270] sm:$0xff] }
  0x70   :  { %1855 = vmatpush.bf16.msra.mxu3 %v2879_v45  ;;  %vm111_vm8 = vcmp.eq.s32.totalorder %v3281_v26, %v3207_v54  ;;  %v2860_v45 = vld [vmem:[%s3733_s1 + $0x260] sm:$0xff] }
  0x71   :  { %v2084_v11 = vsel %vm111_vm8, 1.0, %v3028_v1 }
  0x72   :  { %v117_v18 = vpack.c.bf16 %v2084_v11, %v2084_v11  ;;  %v2910_v11 = vld [vmem:[%s3733_s1 + $0x3f0] sm:$0xff] }
  0x74   :  { %v23_v30 = vpop.permute.xlu1 %22  ;;  %v51_v31 = vpop.permute.xlu0 %50  ;;  %1856 = vmatpush.bf16.msra.mxu3 %v2878_v61  ;;  %v339_v28 = vunpack.c.l.b16 %v117_v18  ;;  %v2864_v61 = vld [vmem:[%s3733_s1 + $0x280] sm:$0xff] }
  0x75   :  { %3004 = vset.pattern.permute.xlu1 %v3030_v33  ;;  %vm55_vm2 = vcmp.eq.s32.totalorder %v51_v31, %v3207_v54  ;;  %vm27_vm3 = vcmp.eq.s32.totalorder %v23_v30, %v3207_v54 }
  0x76   :  { %246 = vperm.xlu1 %3004, %v3060_v2   ;;  %v2076_v35 = vsel %vm55_vm2, 1.0, %v3028_v1  ;;  %v2072_v39 = vsel %vm27_vm3, 1.0, %v3028_v1 }
  0x77   :  { %3005 = vset.pattern.permute.xlu2 %v3030_v33  ;;  %v61_v40 = vpack.c.bf16 %v2076_v35, %v2076_v35  ;;  %v33_v44 = vpack.c.bf16 %v2072_v39, %v2072_v39 }
  0x78   :  { %249 = vperm.xlu2 %3005, %v3068_v4   ;;  %v79_v36 = vpop.permute.xlu2 %78  ;;  %1857 = vmatpush.bf16.msra.mxu3 %v2877_v6 }
  0x79   :  { %v315_v48 = vunpack.c.l.b16 %v61_v40  ;;  %v303_v52 = vunpack.c.l.b16 %v33_v44  ;;  %vm83_vm9 = vcmp.eq.s32.totalorder %v79_v36, %v3207_v54 }
  0x7a   :  { %v2080_v12 = vsel %vm83_vm9, 1.0, %v3028_v1 }
  0x7b   :  { %v89_v19 = vpack.c.bf16 %v2080_v12, %v2080_v12 }
  0x7c   :  { %v26_v41 = vpop.permute.xlu1 %25  ;;  %v54_v42 = vpop.permute.xlu0 %53  ;;  %1858 = vmatpush.bf16.msra.mxu3 %v2876_v17 }
  0x7d   :  { %vm28_vm4 = vcmp.eq.s32.totalorder %v26_v41, %v3207_v54  ;;  %vm56_vm5 = vcmp.eq.s32.totalorder %v54_v42, %v3207_v54  ;;  %v327_v29 = vunpack.c.l.b16 %v89_v19  ;;  %v2874_v41 = vld [vmem:[%s3733_s1 + $0x2d0] sm:$0xff] }
  0x7e   :  { %v2073_v46 = vsel %vm28_vm4, 1.0, %v3028_v1  ;;  %v2077_v47 = vsel %vm56_vm5, 1.0, %v3028_v1  ;;  %3007 = vset.pattern.permute.xlu1 %v3027_v60 }
  0x7f   :  { %v34_v49 = vpack.c.bf16 %v2073_v46, %v2073_v46  ;;  %v62_v50 = vpack.c.bf16 %v2077_v47, %v2077_v47  ;;  %291 = vperm.xlu1 %3007, %v3068_v4   ;;  %v2850_v47 = vld [vmem:[%s3733_s1 + $0x210] sm:$0xff] }
  0x80   :  { %3008 = vset.pattern.permute.xlu2 %v3031_v51  ;;  %1859 = vmatpush.bf16.msra.mxu3 %v2875_v27  ;;  %v2856_v27 = vld [vmem:[%s3733_s1 + $0x240] sm:$0xff] }
  0x81   :  { %v304_v53 = vunpack.c.l.b16 %v34_v49  ;;  %v316_v55 = vunpack.c.l.b16 %v62_v50  ;;  %v3322_v56 = vpop.permute.xlu2 %123  ;;  %260 = vperm.xlu2 %3008, %v3060_v2   ;;  %v2870_v2 = vld [vmem:[%s3733_s1 + $0x2b0] sm:$0xff]  ;;  %v2873_v49 = vld [vmem:[%s3733_s1 + $0x2c8] sm:$0xff] }
  0x82   :  { %vm126_vm12 = vcmp.eq.s32.totalorder %v3322_v56, %v3207_v54  ;;  %v2859_v56 = vld [vmem:[%s3733_s1 + $0x258] sm:$0xff] }
  0x83   :  { %v305_v59 = vpack.c.b16 %v304_v53, %v303_v52  ;;  %v317_v60 = vpack.c.b16 %v316_v55, %v315_v48  ;;  %v2087_v35 = vsel %vm126_vm12, 1.0, %v3028_v1  ;;  %v2865_v52 = vld [vmem:[%s3733_s1 + $0x288] sm:$0xff] }
  0x84   :  { %v132_v42 = vpack.c.bf16 %v2087_v35, %v2087_v35  ;;  %1860 = vmatpush.bf16.msra.mxu3 %v2874_v41  ;;  %v2884_v41 = vld [vmem:[%s3733_s1 + $0x320] sm:$0xff] }
  0x85   :  { %1709 = vmatmul.bf16.vlgmr.msra.gmra.mxu0 %v305_v59  ;;  %v40_v62 = vpop.permute.xlu1 %39  ;;  %v37_v63 = vpop.permute.xlu0 %36  ;;  %1737 = vmatmul.bf16.vlgmr.msra.gmra.mxu2 %v317_v60  ;;  %v2872_v59 = vld [vmem:[%s3733_s1 + $0x2c0] sm:$0xff] }
  0x86   :  { %vm42_vm6 = vcmp.eq.s32.totalorder %v40_v62, %v3207_v54  ;;  %vm41_vm7 = vcmp.eq.s32.totalorder %v37_v63, %v3207_v54  ;;  %1841 = vmatpush.bf16.msra.mxu2 %v2871_v57  ;;  %1813 = vmatpush.bf16.msra.mxu0 %v2855_v58  ;;  %v346_v50 = vunpack.c.l.b16 %v132_v42  ;;  %v2849_v58 = vld [vmem:[%s3733_s1 + $0x208] sm:$0xff]  ;;  %v2911_v62 = vld [vmem:[%s3733_s1 + $0x3f8] sm:$0xff] }
  0x87   :  { %v2075_v3 = vsel %vm42_vm6, 1.0, %v3028_v1  ;;  %v2074_v5 = vsel %vm41_vm7, 1.0, %v3028_v1  ;;  %3009 = vset.pattern.permute.xlu1 %v3031_v51  ;;  %v2899_v42 = vld [vmem:[%s3733_s1 + $0x398] sm:$0xff] }
  0x88   :  { %v48_v7 = vpack.c.bf16 %v2075_v3, %v2075_v3  ;;  %v47_v8 = vpack.c.bf16 %v2074_v5, %v2074_v5  ;;  %263 = vperm.xlu1 %3009, %v3068_v4   ;;  %v2853_v4 = vld [vmem:[%s3733_s1 + $0x228] sm:$0xff]  ;;  %1861 = vmatpush.bf16.msra.mxu3 %v2873_v49  ;;  %v2858_v3 = vld [vmem:[%s3733_s1 + $0x250] sm:$0xff] }
  0x89   :  { %v2898_v49 = vld [vmem:[%s3733_s1 + $0x390] sm:$0xff] }
  0x8a   :  { %v310_v9 = vunpack.c.l.b16 %v48_v7  ;;  %v309_v10 = vunpack.c.l.b16 %v47_v8  ;;  %1842 = vmatpush.bf16.msra.mxu2 %v2870_v2  ;;  %1814 = vmatpush.bf16.msra.mxu0 %v2854_v0  ;;  %v3356_v14 = vpop.permute.xlu2 %95  ;;  %v2903_v2 = vld [vmem:[%s3733_s1 + $0x3b8] sm:$0xff]  ;;  %v2848_v7 = vld [vmem:[%s3733_s1 + $0x200] sm:$0xff] }
  0x8b   :  { %vm98_vm14 = vcmp.eq.s32.totalorder %v3356_v14, %v3207_v54  ;;  %v2902_v14 = vld [vmem:[%s3733_s1 + $0x3b0] sm:$0xff] }
  0x8c   :  { %v311_v16 = vpack.c.b16 %v310_v9, %v309_v10  ;;  %v2083_v55 = vsel %vm98_vm14, 1.0, %v3028_v1  ;;  %1862 = vmatpush.bf16.msra.mxu3 %v2872_v59  ;;  %v2887_v10 = vld [vmem:[%s3733_s1 + $0x338] sm:$0xff] }
  0x8d   :  { %v104_v63 = vpack.c.bf16 %v2083_v55, %v2083_v55  ;;  %v2892_v55 = vld [vmem:[%s3733_s1 + $0x360] sm:$0xff] }
  0x8e   :  { %v110_v20 = vpop.permute.xlu1 %109  ;;  %1723 = vmatmul.bf16.vlgmr.msra.gmra.mxu1 %v311_v16  ;;  %v82_v21 = vpop.permute.xlu0 %81  ;;  %1843 = vmatpush.bf16.msra.mxu2 %v2869_v13  ;;  %v2857_v16 = vld [vmem:[%s3733_s1 + $0x248] sm:$0xff] }
  0x8f   :  { %vm112_vm10 = vcmp.eq.s32.totalorder %v110_v20, %v3207_v54  ;;  %vm84_vm11 = vcmp.eq.s32.totalorder %v82_v21, %v3207_v54  ;;  %1827 = vmatpush.bf16.msra.mxu1 %v2863_v15  ;;  %1815 = vmatpush.bf16.msra.mxu0 %v2853_v4  ;;  %v334_v12 = vunpack.c.l.b16 %v104_v63  ;;  %v2886_v20 = vld [vmem:[%s3733_s1 + $0x330] sm:$0xff]  ;;  %v2909_v21 = vld [vmem:[%s3733_s1 + $0x3e8] sm:$0xff] }
  0x90   :  { %v2085_v25 = vsel %vm112_vm10, 1.0, %v3028_v1  ;;  %v2081_v26 = vsel %vm84_vm11, 1.0, %v3028_v1 }
  0x91   :  { %v118_v30 = vpack.c.bf16 %v2085_v25, %v2085_v25  ;;  %v90_v31 = vpack.c.bf16 %v2081_v26, %v2081_v26 }
  0x92   :  { %1844 = vmatpush.bf16.msra.mxu2 %v2868_v22 }
  0x93   :  { %v340_v33 = vunpack.c.l.b16 %v118_v30  ;;  %v328_v34 = vunpack.c.l.b16 %v90_v31  ;;  %1828 = vmatpush.bf16.msra.mxu1 %v2862_v23  ;;  %1816 = vmatpush.bf16.msra.mxu0 %v2852_v24  ;;  %v3389_v36 = vpop.permute.xlu2 %134  ;;  %v2901_v23 = vld [vmem:[%s3733_s1 + $0x3a8] sm:$0xff]  ;;  %v2908_v31 = vld [vmem:[%s3733_s1 + $0x3e0] sm:$0xff] }
  0x94   :  { %v2885_v30 = vld [vmem:[%s3733_s1 + $0x328] sm:$0xff]  ;;  %vm139_vm4 = vcmp.eq.s32.totalorder %v3389_v36, %v3207_v54 }
  0x95   :  { %v329_v39 = vpack.c.b16 %v328_v34, %v327_v29  ;;  %v341_v40 = vpack.c.b16 %v340_v33, %v339_v28  ;;  %v2895_v29 = vld [vmem:[%s3733_s1 + $0x378] sm:$0xff]  ;;  %v2900_v33 = vld [vmem:[%s3733_s1 + $0x3a0] sm:$0xff] }
  0x96   :  { %1845 = vmatpush.bf16.msra.mxu2 %v2867_v32 }
  0x97   :  { %v121_v44 = vpop.permute.xlu1 %120  ;;  %1765 = vmatmul.bf16.vlgmr.msrb.gmra.mxu0 %v329_v39  ;;  %1793 = vmatmul.bf16.vlgmr.msrb.gmra.mxu2 %v341_v40  ;;  %v163_v46 = vpop.permute.xlu0 %162  ;;  %v2088_v39 = vsel %vm139_vm4, 1.0, %v3028_v1 }
  0x98   :  { %vm125_vm13 = vcmp.eq.s32.totalorder %v121_v44, %v3207_v54  ;;  %1829 = vmatpush.bf16.msra.mxu1 %v2861_v37  ;;  %1817 = vmatpush.bf16.msra.mxu0 %v2851_v38  ;;  %vm167_vm2 = vcmp.eq.s32.totalorder %v163_v46, %v3207_v54  ;;  %v2894_v38 = vld [vmem:[%s3733_s1 + $0x370] sm:$0xff]  ;;  %v2893_v46 = vld [vmem:[%s3733_s1 + $0x368] sm:$0xff] }
  0x99   :  { %v2086_v48 = vsel %vm125_vm13, 1.0, %v3028_v1  ;;  %v2092_v18 = vsel %vm167_vm2, 1.0, %v3028_v1 }
  0x9a   :  { %v131_v51 = vpack.c.bf16 %v2086_v48, %v2086_v48  ;;  %1846 = vmatpush.bf16.msra.mxu2 %v2866_v43  ;;  %v173_v24 = vpack.c.bf16 %v2092_v18, %v2092_v18  ;;  %v2907_v43 = vld [vmem:[%s3733_s1 + $0x3d8] sm:$0xff]  ;;  %v2934_v18 = vld [vmem:[%s3733_s1 + $0x4b0] sm:$0xff] }
  0x9b   :  { %v2883_v48 = vld [vmem:[%s3733_s1 + $0x318] sm:$0xff] }
  0x9c   :  { %v345_v53 = vunpack.c.l.b16 %v131_v51  ;;  %1830 = vmatpush.bf16.msra.mxu1 %v2860_v45  ;;  %1818 = vmatpush.bf16.msra.mxu0 %v2850_v47  ;;  %v177_v57 = vpop.permute.xlu2 %176  ;;  %v363_v35 = vunpack.c.l.b16 %v173_v24  ;;  %v145_v45 = vpack.c.bf16 %v2088_v39, %v2088_v39  ;;  %v2918_v24 = vld [vmem:[%s3733_s1 + $0x430] sm:$0xff]  ;;  %v2932_v39 = vld [vmem:[%s3733_s1 + $0x4a0] sm:$0xff] }
  0x9d   :  { %vm181_vm15 = vcmp.eq.s32.totalorder %v177_v57, %v3207_v54  ;;  %v2882_v57 = vld [vmem:[%s3733_s1 + $0x310] sm:$0xff] }
  0x9e   :  { %v347_v60 = vpack.c.b16 %v346_v50, %v345_v53  ;;  %1847 = vmatpush.bf16.msra.mxu2 %v2865_v52  ;;  %v2094_v6 = vsel %vm181_vm15, 1.0, %v3028_v1  ;;  %v2906_v50 = vld [vmem:[%s3733_s1 + $0x3d0] sm:$0xff]  ;;  %v351_v52 = vunpack.c.l.b16 %v145_v45 }
  0x9f   :  { %v187_v15 = vpack.c.bf16 %v2094_v6, %v2094_v6  ;;  %v2896_v6 = vld [vmem:[%s3733_s1 + $0x380] sm:$0xff] }
  0xa0   :  { %1807 = vmatmul.bf16.vlgmr.msrb.gmra.mxu3 %v347_v60  ;;  %v93_v0 = vpop.permute.xlu1 %92  ;;  %1831 = vmatpush.bf16.msra.mxu1 %v2859_v56  ;;  %v180_v5 = vpop.permute.xlu0 %179  ;;  %v2897_v60 = vld [vmem:[%s3733_s1 + $0x388] sm:$0xff] }
  0xa1   :  { %vm97_vm0 = vcmp.eq.s32.totalorder %v93_v0, %v3207_v54  ;;  %1819 = vmatpush.bf16.msra.mxu0 %v2849_v58  ;;  %vm182_vm1 = vcmp.eq.s32.totalorder %v180_v5, %v3207_v54  ;;  %1911 = vmatpush.bf16.msrb.mxu3 %v2911_v62  ;;  %v369_v25 = vunpack.c.l.b16 %v187_v15  ;;  %v2905_v62 = vld [vmem:[%s3733_s1 + $0x3c8] sm:$0xff] }
  0xa2   :  { %v2082_v8 = vsel %vm97_vm0, 1.0, %v3028_v1  ;;  %1848 = vmatpush.bf16.msra.mxu2 %v2864_v61  ;;  %v2095_v9 = vsel %vm182_vm1, 1.0, %v3028_v1 }
  0xa3   :  { %v103_v13 = vpack.c.bf16 %v2082_v8, %v2082_v8  ;;  %v188_v4 = vpack.c.bf16 %v2095_v9, %v2095_v9  ;;  %v2904_v8 = vld [vmem:[%s3733_s1 + $0x3c0] sm:$0xff] }
  0xa4   :  { %1832 = vmatpush.bf16.msra.mxu1 %v2858_v3  ;;  %v2881_v3 = vld [vmem:[%s3733_s1 + $0x308] sm:$0xff] }
  0xa5   :  { %v333_v17 = vunpack.c.l.b16 %v103_v13  ;;  %1820 = vmatpush.bf16.msra.mxu0 %v2848_v7  ;;  %v3464_v19 = vpop.permute.xlu2 %151  ;;  %1912 = vmatpush.bf16.msrb.mxu3 %v2910_v11  ;;  %v370_v26 = vunpack.c.l.b16 %v188_v4  ;;  %v2935_v7 = vld [vmem:[%s3733_s1 + $0x4b8] sm:$0xff] }
  0xa6   :  { %1897 = vmatpush.bf16.msrb.mxu2 %v2903_v2  ;;  %vm154_vm6 = vcmp.eq.s32.totalorder %v3464_v19, %v3207_v54  ;;  %v2891_v2 = vld [vmem:[%s3733_s1 + $0x358] sm:$0xff] }
  0xa7   :  { %v335_v22 = vpack.c.b16 %v334_v12, %v333_v17  ;;  %v371_v37 = vpack.c.b16 %v370_v26, %v369_v25  ;;  %v2091_v59 = vsel %vm154_vm6, 1.0, %v3028_v1  ;;  %v2943_v11 = vld [vmem:[%s3733_s1 + $0x4f8] sm:$0xff]  ;;  %v2933_v26 = vld [vmem:[%s3733_s1 + $0x4a8] sm:$0xff] }
  0xa8   :  { %1833 = vmatpush.bf16.msra.mxu1 %v2857_v16  ;;  %v160_v0 = vpack.c.bf16 %v2091_v59, %v2091_v59  ;;  %v2919_v4 = vld [vmem:[%s3733_s1 + $0x438] sm:$0xff]  ;;  %v2938_v59 = vld [vmem:[%s3733_s1 + $0x4d0] sm:$0xff] }
  0xa9   :  { %1869 = vmatpush.bf16.msrb.mxu0 %v2887_v10  ;;  %v166_v28 = vpop.permute.xlu1 %165  ;;  %1779 = vmatmul.bf16.vlgmr.msrb.gmra.mxu1 %v335_v22  ;;  %v3528_v56 = vpop.permute.xlu0 %190  ;;  %v2890_v10 = vld [vmem:[%s3733_s1 + $0x350] sm:$0xff] }
  0xaa   :  { %1898 = vmatpush.bf16.msrb.mxu2 %v2902_v14  ;;  %vm168_vm3 = vcmp.eq.s32.totalorder %v166_v28, %v3207_v54  ;;  %1913 = vmatpush.bf16.msrb.mxu3 %v2909_v21  ;;  %v358_v12 = vunpack.c.l.b16 %v160_v0  ;;  %v2880_v14 = vld [vmem:[%s3733_s1 + $0x300] sm:$0xff]  ;;  %v2942_v21 = vld [vmem:[%s3733_s1 + $0x4f0] sm:$0xff]  ;;  %vm195_vm12 = vcmp.eq.s32.totalorder %v3528_v56, %v3207_v54 }
  0xab   :  { %v2093_v32 = vsel %vm168_vm3, 1.0, %v3028_v1 }
  0xac   :  { %v174_v34 = vpack.c.bf16 %v2093_v32, %v2093_v32  ;;  %1834 = vmatpush.bf16.msra.mxu1 %v2856_v27  ;;  %v2927_v32 = vld [vmem:[%s3733_s1 + $0x478] sm:$0xff] }
  0xad   :  { %1870 = vmatpush.bf16.msrb.mxu0 %v2886_v20  ;;  %v2889_v20 = vld [vmem:[%s3733_s1 + $0x348] sm:$0xff] }
  0xae   :  { %1899 = vmatpush.bf16.msrb.mxu2 %v2901_v23  ;;  %v364_v40 = vunpack.c.l.b16 %v174_v34  ;;  %v3498_v36 = vpop.permute.xlu2 %221  ;;  %1914 = vmatpush.bf16.msrb.mxu3 %v2908_v31 }
  0xaf   :  { %vm224_vm8 = vcmp.eq.s32.totalorder %v3498_v36, %v3207_v54  ;;  %v2096_v36 = vsel %vm195_vm12, 1.0, %v3028_v1 }
  0xb0   :  { %1883 = vmatpush.bf16.msrb.mxu1 %v2895_v29  ;;  %v365_v44 = vpack.c.b16 %v364_v40, %v363_v35  ;;  %1863 = vmatmul.bf16.vlgmr.msra.gmra.mxu3 %v371_v37  ;;  %v2101_v17 = vsel %vm224_vm8, 1.0, %v3028_v1  ;;  %v2888_v29 = vld [vmem:[%s3733_s1 + $0x340] sm:$0xff]  ;;  %v2917_v35 = vld [vmem:[%s3733_s1 + $0x428] sm:$0xff]  ;;  %v201_v45 = vpack.c.bf16 %v2096_v36, %v2096_v36 }
  0xb1   :  { %1871 = vmatpush.bf16.msrb.mxu0 %v2885_v30  ;;  %v230_v23 = vpack.c.bf16 %v2101_v17, %v2101_v17  ;;  %v2941_v30 = vld [vmem:[%s3733_s1 + $0x4e8] sm:$0xff]  ;;  %v2912_v17 = vld [vmem:[%s3733_s1 + $0x400] sm:$0xff] }
  0xb2   :  { %1900 = vmatpush.bf16.msrb.mxu2 %v2900_v33  ;;  %v138_v47 = vpop.permute.xlu1 %137  ;;  %1915 = vmatpush.bf16.msrb.mxu3 %v2907_v43  ;;  %v208_v15 = vpop.permute.xlu0 %207 }
  0xb3   :  { %1849 = vmatmul.bf16.vlgmr.msra.gmra.mxu2 %v365_v44  ;;  %vm140_vm5 = vcmp.eq.s32.totalorder %v138_v47, %v3207_v54  ;;  %vm210_vm10 = vcmp.eq.s32.totalorder %v208_v15, %v3207_v54  ;;  %v388_v33 = vunpack.c.l.b16 %v230_v23  ;;  %v2916_v44 = vld [vmem:[%s3733_s1 + $0x420] sm:$0xff]  ;;  %v2922_v15 = vld [vmem:[%s3733_s1 + $0x450] sm:$0xff] }
  0xb4   :  { %1884 = vmatpush.bf16.msrb.mxu1 %v2894_v38  ;;  %v2089_v51 = vsel %vm140_vm5, 1.0, %v3028_v1  ;;  %v2099_v28 = vsel %vm210_vm10, 1.0, %v3028_v1 }
  0xb5   :  { %1872 = vmatpush.bf16.msrb.mxu0 %v2884_v41  ;;  %v146_v53 = vpack.c.bf16 %v2089_v51, %v2089_v51  ;;  %v216_v38 = vpack.c.bf16 %v2099_v28, %v2099_v28  ;;  %v2940_v41 = vld [vmem:[%s3733_s1 + $0x4e0] sm:$0xff]  ;;  %v2925_v51 = vld [vmem:[%s3733_s1 + $0x468] sm:$0xff] }
  0xb6   :  { %1901 = vmatpush.bf16.msrb.mxu2 %v2899_v42  ;;  %1916 = vmatpush.bf16.msrb.mxu3 %v2906_v50  ;;  %v2926_v42 = vld [vmem:[%s3733_s1 + $0x470] sm:$0xff]  ;;  %v2939_v50 = vld [vmem:[%s3733_s1 + $0x4d8] sm:$0xff] }
  0xb7   :  { %v352_v58 = vunpack.c.l.b16 %v146_v53  ;;  %v3537_v61 = vpop.permute.xlu2 %232  ;;  %v382_v47 = vunpack.c.l.b16 %v216_v38  ;;  %v2915_v53 = vld [vmem:[%s3733_s1 + $0x418] sm:$0xff] }
  0xb8   :  { %1885 = vmatpush.bf16.msrb.mxu1 %v2893_v46  ;;  %vm237_vm14 = vcmp.eq.s32.totalorder %v3537_v61, %v3207_v54 }
  0xb9   :  { %1873 = vmatpush.bf16.msrb.mxu0 %v2883_v48  ;;  %v353_v63 = vpack.c.b16 %v352_v58, %v351_v52  ;;  %v2931_v48 = vld [vmem:[%s3733_s1 + $0x498] sm:$0xff]  ;;  %v2930_v58 = vld [vmem:[%s3733_s1 + $0x490] sm:$0xff] }
  0xba   :  { %1902 = vmatpush.bf16.msrb.mxu2 %v2898_v49  ;;  %1917 = vmatpush.bf16.msrb.mxu3 %v2905_v62  ;;  %v2924_v62 = vld [vmem:[%s3733_s1 + $0x460] sm:$0xff] }
  0xbb   :  { %v149_v5 = vpop.permute.xlu1 %148  ;;  %1821 = vmatmul.bf16.vlgmr.msra.gmra.mxu0 %v353_v63  ;;  %v2914_v63 = vld [vmem:[%s3733_s1 + $0x410] sm:$0xff] }
  0xbc   :  { %1886 = vmatpush.bf16.msrb.mxu1 %v2892_v55  ;;  %vm153_vm7 = vcmp.eq.s32.totalorder %v149_v5, %v3207_v54  ;;  %v375_v55 = vunpack.c.l.b16 %v201_v45 }
  0xbd   :  { %1874 = vmatpush.bf16.msrb.mxu0 %v2882_v57  ;;  %v2090_v9 = vsel %vm153_vm7, 1.0, %v3028_v1 }
  0xbe   :  { %1903 = vmatpush.bf16.msrb.mxu2 %v2897_v60  ;;  %v159_v13 = vpack.c.bf16 %v2090_v9, %v2090_v9  ;;  %1918 = vmatpush.bf16.msrb.mxu3 %v2904_v8  ;;  %v2102_v60 = vsel %vm237_vm14, 1.0, %v3028_v1  ;;  %v2923_v8 = vld [vmem:[%s3733_s1 + $0x458] sm:$0xff]  ;;  %v2913_v9 = vld [vmem:[%s3733_s1 + $0x408] sm:$0xff] }
  0xbf   :  { %v243_v5 = vpack.c.bf16 %v2102_v60, %v2102_v60 }
  0xc0   :  { %1887 = vmatpush.bf16.msrb.mxu1 %v2891_v2  ;;  %v357_v16 = vunpack.c.l.b16 %v159_v13  ;;  %v205_v19 = vpop.permute.xlu2 %204 }
  0xc1   :  { %1875 = vmatpush.bf16.msrb.mxu0 %v2881_v3  ;;  %vm209_vm9 = vcmp.eq.s32.totalorder %v205_v19, %v3207_v54  ;;  %v2929_v3 = vld [vmem:[%s3733_s1 + $0x488] sm:$0xff] }
  0xc2   :  { %1904 = vmatpush.bf16.msrb.mxu2 %v2896_v6  ;;  %1967 = vmatpush.bf16.msra.mxu3 %v2943_v11  ;;  %v359_v22 = vpack.c.b16 %v358_v12, %v357_v16  ;;  %v2098_v27 = vsel %vm209_vm9, 1.0, %v3028_v1  ;;  %v2937_v6 = vld [vmem:[%s3733_s1 + $0x4c8] sm:$0xff]  ;;  %v2928_v11 = vld [vmem:[%s3733_s1 + $0x480] sm:$0xff]  ;;  %v393_v12 = vunpack.c.l.b16 %v243_v5 }
  0xc3   :  { %v215_v37 = vpack.c.bf16 %v2098_v27, %v2098_v27 }
  0xc4   :  { %1888 = vmatpush.bf16.msrb.mxu1 %v2890_v10  ;;  %v219_v25 = vpop.permute.xlu1 %218 }
  0xc5   :  { %1876 = vmatpush.bf16.msrb.mxu0 %v2880_v14  ;;  %1835 = vmatmul.bf16.vlgmr.msra.gmra.mxu1 %v359_v22  ;;  %vm223_vm11 = vcmp.eq.s32.totalorder %v219_v25, %v3207_v54  ;;  %v381_v46 = vunpack.c.l.b16 %v215_v37  ;;  %v2936_v14 = vld [vmem:[%s3733_s1 + $0x4c0] sm:$0xff] }
  0xc6   :  { %1953 = vmatpush.bf16.msra.mxu2 %v2935_v7  ;;  %1968 = vmatpush.bf16.msra.mxu3 %v2942_v21  ;;  %v2100_v31 = vsel %vm223_vm11, 1.0, %v3028_v1  ;;  %v2921_v21 = vld [vmem:[%s3733_s1 + $0x448] sm:$0xff] }
  0xc7   :  { %v229_v34 = vpack.c.bf16 %v2100_v31, %v2100_v31  ;;  %v383_v57 = vpack.c.b16 %v382_v47, %v381_v46  ;;  %v289_v31 = vpop.permute.xlu0 %288 }
  0xc8   :  { %1889 = vmatpush.bf16.msrb.mxu1 %v2889_v20  ;;  %vm293_vm4 = vcmp.eq.s32.totalorder %v289_v31, %v3207_v54 }
  0xc9   :  { %1925 = vmatpush.bf16.msra.mxu0 %v2919_v4  ;;  %v387_v40 = vunpack.c.l.b16 %v229_v34  ;;  %v278_v0 = vpop.permute.xlu2 %277  ;;  %v2110_v38 = vsel %vm293_vm4, 1.0, %v3028_v1 }
  0xca   :  { %1954 = vmatpush.bf16.msra.mxu2 %v2934_v18  ;;  %1969 = vmatpush.bf16.msra.mxu3 %v2941_v30  ;;  %vm280_vm0 = vcmp.eq.s32.totalorder %v278_v0, %v3207_v54 }
  0xcb   :  { %v389_v43 = vpack.c.b16 %v388_v33, %v387_v40  ;;  %v2109_v16 = vsel %vm280_vm0, 1.0, %v3028_v1  ;;  %v299_v40 = vpack.c.bf16 %v2110_v38, %v2110_v38 }
  0xcc   :  { %1890 = vmatpush.bf16.msrb.mxu1 %v2888_v29  ;;  %v286_v19 = vpack.c.bf16 %v2109_v16, %v2109_v16 }
  0xcd   :  { %1926 = vmatpush.bf16.msra.mxu0 %v2918_v24  ;;  %v194_v49 = vpop.permute.xlu1 %193  ;;  %1905 = vmatmul.bf16.vlgmr.msrb.gmra.mxu2 %v389_v43 }
  0xce   :  { %1955 = vmatpush.bf16.msra.mxu2 %v2933_v26  ;;  %1970 = vmatpush.bf16.msra.mxu3 %v2940_v41  ;;  %vm196_vm13 = vcmp.eq.s32.totalorder %v194_v49, %v3207_v54  ;;  %v412_v24 = vunpack.c.l.b16 %v286_v19  ;;  %v2920_v26 = vld [vmem:[%s3733_s1 + $0x440] sm:$0xff] }
  0xcf   :  { %v2097_v52 = vsel %vm196_vm13, 1.0, %v3028_v1 }
  0xd0   :  { %1939 = vmatpush.bf16.msra.mxu1 %v2927_v32  ;;  %v202_v56 = vpack.c.bf16 %v2097_v52, %v2097_v52 }
  0xd1   :  { %1927 = vmatpush.bf16.msra.mxu0 %v2917_v35 }
  0xd2   :  { %1956 = vmatpush.bf16.msra.mxu2 %v2932_v39  ;;  %1971 = vmatpush.bf16.msra.mxu3 %v2939_v50  ;;  %v376_v61 = vunpack.c.l.b16 %v202_v56  ;;  %v250_v20 = vpop.permute.xlu2 %249 }
  0xd3   :  { %vm252_vm2 = vcmp.eq.s32.totalorder %v250_v20, %v3207_v54  ;;  %v2948_v20 = vld [vmem:[%s3735_s2 + $0x20] sm:$0xff] }
  0xd4   :  { %1940 = vmatpush.bf16.msra.mxu1 %v2926_v42  ;;  %v377_v2 = vpack.c.b16 %v376_v61, %v375_v55  ;;  %v2105_v28 = vsel %vm252_vm2, 1.0, %v3028_v1 }
  0xd5   :  { %1928 = vmatpush.bf16.msra.mxu0 %v2916_v44  ;;  %1891 = vmatmul.bf16.vlgmr.msrb.gmra.mxu1 %v383_v57  ;;  %v258_v30 = vpack.c.bf16 %v2105_v28, %v2105_v28  ;;  %v417_v44 = vunpack.c.l.b16 %v299_v40 }
  0xd6   :  { %1957 = vmatpush.bf16.msra.mxu2 %v2931_v48  ;;  %1972 = vmatpush.bf16.msra.mxu3 %v2938_v59  ;;  %v236_v7 = vpop.permute.xlu1 %235 }
  0xd7   :  { %1877 = vmatmul.bf16.vlgmr.msrb.gmra.mxu0 %v377_v2  ;;  %vm238_vm15 = vcmp.eq.s32.totalorder %v236_v7, %v3207_v54  ;;  %v400_v34 = vunpack.c.l.b16 %v258_v30  ;;  %v2946_v30 = vld [vmem:[%s3735_s2 + $0x10] sm:$0xff] }
  0xd8   :  { %1941 = vmatpush.bf16.msra.mxu1 %v2925_v51  ;;  %v2103_v10 = vsel %vm238_vm15, 1.0, %v3028_v1 }
  0xd9   :  { %1929 = vmatpush.bf16.msra.mxu0 %v2915_v53  ;;  %v244_v13 = vpack.c.bf16 %v2103_v10, %v2103_v10 }
  0xda   :  { %1958 = vmatpush.bf16.msra.mxu2 %v2930_v58  ;;  %1973 = vmatpush.bf16.msra.mxu3 %v2937_v6 }
  0xdb   :  { %v394_v4 = vunpack.c.l.b16 %v244_v13  ;;  %v261_v36 = vpop.permute.xlu2 %260  ;;  %v2949_v13 = vld [vmem:[%s3735_s2 + $0x28] sm:$0xff] }
  0xdc   :  { %1942 = vmatpush.bf16.msra.mxu1 %v2924_v62  ;;  %vm265_vm6 = vcmp.eq.s32.totalorder %v261_v36, %v3207_v54 }
  0xdd   :  { %1930 = vmatpush.bf16.msra.mxu0 %v2914_v63  ;;  %v395_v18 = vpack.c.b16 %v394_v4, %v393_v12  ;;  %v2106_v46 = vsel %vm265_vm6, 1.0, %v3028_v1 }
  0xde   :  { %1959 = vmatpush.bf16.msra.mxu2 %v2929_v3  ;;  %1974 = vmatpush.bf16.msra.mxu3 %v2936_v14  ;;  %v271_v48 = vpack.c.bf16 %v2106_v46, %v2106_v46 }
  0xdf   :  { %v275_v22 = vpop.permute.xlu1 %274  ;;  %1919 = vmatmul.bf16.vlgmr.msrb.gmra.mxu3 %v395_v18 }
  0xe0   :  { %1943 = vmatpush.bf16.msra.mxu1 %v2923_v8  ;;  %vm279_vm1 = vcmp.eq.s32.totalorder %v275_v22, %v3207_v54  ;;  %v405_v51 = vunpack.c.l.b16 %v271_v48 }
  0xe1   :  { %1931 = vmatpush.bf16.msra.mxu0 %v2913_v9  ;;  %v2108_v23 = vsel %vm279_vm1, 1.0, %v3028_v1 }
  0xe2   :  { %1960 = vmatpush.bf16.msra.mxu2 %v2928_v11  ;;  %v285_v25 = vpack.c.bf16 %v2108_v23, %v2108_v23  ;;  %v2950_v11 = vld [vmem:[%s3735_s2 + $0x30] sm:$0xff] }
  0xe4   :  { %1944 = vmatpush.bf16.msra.mxu1 %v2922_v15  ;;  %v411_v27 = vunpack.c.l.b16 %v285_v25 }
  0xe5   :  { %1932 = vmatpush.bf16.msra.mxu0 %v2912_v17 }
  0xe6   :  { %v413_v29 = vpack.c.b16 %v412_v24, %v411_v27  ;;  %v2947_v24 = vld [vmem:[%s3735_s2 + $0x18] sm:$0xff] }
  0xe8   :  { %1945 = vmatpush.bf16.msra.mxu1 %v2921_v21  ;;  %v247_v32 = vpop.permute.xlu1 %246  ;;  %1961 = vmatmul.bf16.vlgmr.msra.gmra.mxu2 %v413_v29 }
  0xe9   :  { %vm251_vm3 = vcmp.eq.s32.totalorder %v247_v32, %v3207_v54 }
  0xea   :  { %v2104_v33 = vsel %vm251_vm3, 1.0, %v3028_v1 }
  0xeb   :  { %v257_v35 = vpack.c.bf16 %v2104_v33, %v2104_v33 }
  0xec   :  { %1946 = vmatpush.bf16.msra.mxu1 %v2920_v26 }
  0xed   :  { %v399_v37 = vunpack.c.l.b16 %v257_v35 }
  0xef   :  { %v401_v39 = vpack.c.b16 %v400_v34, %v399_v37  ;;  %v2945_v37 = vld [vmem:[%s3735_s2 + $0x8] sm:$0xff] }
  0xf1   :  { %v292_v41 = vpop.permute.xlu1 %291  ;;  %1933 = vmatmul.bf16.vlgmr.msra.gmra.mxu0 %v401_v39 }
  0xf2   :  { %vm294_vm5 = vcmp.eq.s32.totalorder %v292_v41, %v3207_v54  ;;  %v1752_v59 = vpop.f32.mrf.mxu3  ;;  %v2944_v41 = vld [vmem:[%s3735_s2] sm:$0xff] }
  0xf3   :  { %v2111_v42 = vsel %vm294_vm5, 1.0, %v3028_v1 }
  0xf4   :  { %v300_v43 = vpack.c.bf16 %v2111_v42, %v2111_v42 }
  0xf6   :  { %v418_v45 = vunpack.c.l.b16 %v300_v43 }
  0xf8   :  { %v419_v47 = vpack.c.b16 %v418_v45, %v417_v44 }
  0xfa   :  { %v264_v49 = vpop.permute.xlu1 %263  ;;  %1975 = vmatmul.bf16.vlgmr.msra.gmra.mxu3 %v419_v47  ;;  %v1754_v63 = vpop.f32.mrf.mxu3 }
  0xfb   :  { %vm266_vm7 = vcmp.eq.s32.totalorder %v264_v49, %v3207_v54 }
  0xfc   :  { %v2107_v50 = vsel %vm266_vm7, 1.0, %v3028_v1  ;;  %v2951_v1 = vld [vmem:[%s3735_s2 + $0x38] sm:$0xff] }
  0xfd   :  { %v272_v52 = vpack.c.bf16 %v2107_v50, %v2107_v50  ;;  %2052 = vmatpush.bf16.msrb.mxu0 %v2951_v1 }
  0xff   :  { %v406_v53 = vunpack.c.l.b16 %v272_v52 }
 0x101   :  { %v407_v55 = vpack.c.b16 %v406_v53, %v405_v51  ;;  %2053 = vmatpush.bf16.msrb.mxu0 %v2950_v11 }
 0x102   :  { %v1710_v56 = vpop.f32.mrf.mxu0 }
 0x103   :  { %1947 = vmatmul.bf16.vlgmr.msra.gmra.mxu1 %v407_v55 }
 0x105   :  { %2054 = vmatpush.bf16.msrb.mxu0 %v2949_v13 }
 0x108   :  { %v1738_v57 = vpop.f32.mrf.mxu2 }
 0x109   :  { %2055 = vmatpush.bf16.msrb.mxu0 %v2948_v20 }
 0x10a   :  { %v1712_v60 = vpop.f32.mrf.mxu0 }
 0x10b   :  { %v1724_v58 = vpop.f32.mrf.mxu1 }
 0x10c   :  { %v1725_v6 = vadd.f32 %v1724_v58, %v1710_v56 }
 0x10d   :  { %2056 = vmatpush.bf16.msrb.mxu0 %v2947_v24 }
 0x10e   :  { %v1739_v12 = vadd.f32 %v1738_v57, %v1725_v6 }
 0x110   :  { %v1740_v61 = vpop.f32.mrf.mxu2  ;;  %v1753_v15 = vadd.f32 %v1752_v59, %v1739_v12 }
 0x111   :  { %2057 = vmatpush.bf16.msrb.mxu0 %v2946_v30 }
 0x113   :  { %v1726_v62 = vpop.f32.mrf.mxu1 }
 0x114   :  { %v1766_v2 = vpop.f32.mrf.mxu0  ;;  %v1727_v14 = vadd.f32 %v1726_v62, %v1712_v60 }
 0x115   :  { %v1767_v18 = vadd.f32 %v1766_v2, %v1753_v15  ;;  %2058 = vmatpush.bf16.msrb.mxu0 %v2945_v37 }
 0x116   :  { %v1741_v17 = vadd.f32 %v1740_v61, %v1727_v14 }
 0x118   :  { %v1755_v23 = vadd.f32 %v1754_v63, %v1741_v17 }
 0x119   :  { %2059 = vmatpush.bf16.msrb.mxu0 %v2944_v41 }
 0x11a   :  { %v1794_v0 = vpop.f32.mrf.mxu2 }
 0x11c   :  { %v1768_v54 = vpop.f32.mrf.mxu0 }
 0x11d   :  { %v1769_v25 = vadd.f32 %v1768_v54, %v1755_v23 }
 0x122   :  { %v1796_v7 = vpop.f32.mrf.mxu2 }
 0x123   :  { %v1808_v5 = vpop.f32.mrf.mxu3 }
 0x126   :  { %v1780_v3 = vpop.f32.mrf.mxu1 }
 0x127   :  { %v1781_v21 = vadd.f32 %v1780_v3, %v1767_v18 }
 0x129   :  { %v1795_v26 = vadd.f32 %v1794_v0, %v1781_v21 }
 0x12b   :  { %v1810_v9 = vpop.f32.mrf.mxu3  ;;  %v1809_v31 = vadd.f32 %v1808_v5, %v1795_v26 }
 0x12e   :  { %v1782_v8 = vpop.f32.mrf.mxu1 }
 0x12f   :  { %v1783_v27 = vadd.f32 %v1782_v8, %v1769_v25 }
 0x131   :  { %v1797_v34 = vadd.f32 %v1796_v7, %v1783_v27 }
 0x133   :  { %v1864_v19 = vpop.f32.mrf.mxu3  ;;  %v1811_v39 = vadd.f32 %v1810_v9, %v1797_v34 }
 0x136   :  { %v1850_v4 = vpop.f32.mrf.mxu2 }
 0x138   :  { %v1822_v10 = vpop.f32.mrf.mxu0 }
 0x139   :  { %v1823_v35 = vadd.f32 %v1822_v10, %v1809_v31 }
 0x13b   :  { %v1866_v32 = vpop.f32.mrf.mxu3 }
 0x13e   :  { %v1852_v28 = vpop.f32.mrf.mxu2 }
 0x140   :  { %v1824_v22 = vpop.f32.mrf.mxu0 }
 0x141   :  { %v1825_v42 = vadd.f32 %v1824_v22, %v1811_v39 }
 0x142   :  { %v1836_v16 = vpop.f32.mrf.mxu1 }
 0x143   :  { %v1837_v38 = vadd.f32 %v1836_v16, %v1823_v35  ;;  %v3010_v16 = vld [vmem:[%s3734_s3] ss:$0 sm:$0xff] }
 0x145   :  { %v1851_v43 = vadd.f32 %v1850_v4, %v1837_v38 }
 0x147   :  { %v1865_v47 = vadd.f32 %v1864_v19, %v1851_v43 }
 0x14a   :  { %v1838_v29 = vpop.f32.mrf.mxu1 }
 0x14b   :  { %v1839_v45 = vadd.f32 %v1838_v29, %v1825_v42 }
 0x14d   :  { %v1853_v48 = vadd.f32 %v1852_v28, %v1839_v45 }
 0x14f   :  { %v1867_v53 = vadd.f32 %v1866_v32, %v1853_v48 }
 0x150   :  { %v1906_v40 = vpop.f32.mrf.mxu2 }
 0x152   :  { %v1892_v36 = vpop.f32.mrf.mxu1 }
 0x154   :  { %v1878_v33 = vpop.f32.mrf.mxu0 }
 0x155   :  { %v1879_v49 = vadd.f32 %v1878_v33, %v1865_v47 }
 0x157   :  { %v1893_v52 = vadd.f32 %v1892_v36, %v1879_v49 }
 0x158   :  { %v1908_v50 = vpop.f32.mrf.mxu2 }
 0x159   :  { %v1907_v58 = vadd.f32 %v1906_v40, %v1893_v52 }
 0x15a   :  { %v1894_v51 = vpop.f32.mrf.mxu1 }
 0x15c   :  { %v1880_v46 = vpop.f32.mrf.mxu0 }
 0x15d   :  { %v1881_v57 = vadd.f32 %v1880_v46, %v1867_v53 }
 0x15f   :  { %v1895_v59 = vadd.f32 %v1894_v51, %v1881_v57 }
 0x161   :  { %v1909_v0 = vadd.f32 %v1908_v50, %v1895_v59 }
 0x162   :  { %v1920_v44 = vpop.f32.mrf.mxu3 }
 0x163   :  { %v1921_v60 = vadd.f32 %v1920_v44, %v1907_v58 }
 0x16a   :  { %v1922_v55 = vpop.f32.mrf.mxu3 }
 0x16b   :  { %v1962_v61 = vpop.f32.mrf.mxu2  ;;  %v1923_v54 = vadd.f32 %v1922_v55, %v1909_v0 }
 0x16e   :  { %v1934_v56 = vpop.f32.mrf.mxu0 }
 0x16f   :  { %v1935_v63 = vadd.f32 %v1934_v56, %v1921_v60 }
 0x173   :  { %v1964_v9 = vpop.f32.mrf.mxu2 }
 0x176   :  { %v1936_v5 = vpop.f32.mrf.mxu0 }
 0x177   :  { %v1937_v1 = vadd.f32 %v1936_v5, %v1923_v54 }
 0x17d   :  { %v1976_v2 = vpop.f32.mrf.mxu3 }
 0x180   :  { %v1948_v62 = vpop.f32.mrf.mxu1 }
 0x181   :  { %v1949_v3 = vadd.f32 %v1948_v62, %v1935_v63 }
 0x183   :  { %v1963_v6 = vadd.f32 %v1962_v61, %v1949_v3 }
 0x185   :  { %v1977_v10 = vadd.f32 %v1976_v2, %v1963_v6  ;;  %v1978_v12 = vpop.f32.mrf.mxu3 }
 0x187   :  { %v1981_v14 = vmax.f32 %v1977_v10, 0.0 }
 0x188   :  { %v1950_v7 = vpop.f32.mrf.mxu1 }
 0x189   :  { %v1951_v8 = vadd.f32 %v1950_v7, %v1937_v1 }
 0x18b   :  { %v1965_v11 = vadd.f32 %v1964_v9, %v1951_v8 }
 0x18d   :  { %v1979_v13 = vadd.f32 %v1978_v12, %v1965_v11 }
 0x18f   :  { %v1982_v15 = vmax.f32 %v1979_v13, 0.0 }
 0x191   :  { %v1983_v4 = vpack.c.bf16 %v1982_v15, %v1981_v14 }
 0x193   :  { %2060 = vmatmul.bf16.vlgmr.msrb.gmra.mxu0 %v1983_v4 }
 0x210   :  { %v2061_v17 = vpop.f32.mrf.mxu0 }
 0x211   :  { %v2062_v18 = vadd.f32 %v3010_v16, %v2061_v17 }
 0x213   :  { %2066 = vst [vmem:[%s3736_s4] sm:$0xff] %v2062_v18 }
 0x218   :  { %v2063_v19 = vpop.f32.mrf.mxu0 }
 0x219   :  { %v2064_v20 = vadd.f32 %v3010_v16, %v2063_v19 }
 0x21b   :  { %2067 = vst [vmem:[%s3736_s4 + $0x8] sm:$0xff] %v2064_v20 }

</bundles_post_ra>
